<compile_context>
chip_gen: v6e
topology: v6e:2x2x1
jax: 0.10.0
libtpu: 0.0.40
codegen_flags: <defaults>
</compile_context>

<pallas_src>
import functools

import numpy as np
import jax
import jax.numpy as jnp
from jax import lax
from jax.experimental import pallas as pl
from jax.experimental.pallas import tpu as pltpu


def _double_conv_kernel(p_ref, w1_ref, sb_ref, w2_ref, o_ref, mid_ref, *,
                        TH, W, C_PAD):
    """One (image, row-tile) pair per grid step.

    p_ref  : (1, 1, (TH+2)*W, K1_PAD)  conv1 im2col patches for y1 rows
                                       [r*TH-1, r*TH+TH]  (2-row conv2 halo included)
    w1_ref : (K1_PAD, C_PAD)           conv1 weights, (tap, cin)-major rows
    sb_ref : (4, C_PAD) f32            rows: BN1 scale, BN1 bias, BN2 scale, BN2 bias
    w2_ref : (9*C_PAD, C_PAD)          conv2 weights, (tap, cin)-major rows
    o_ref  : (1, TH*W, C_PAD)          lane-dense output slab for this row tile
    mid_ref: (TH+2, W+8, C_PAD)        y1 staging; cols [0,W) data, [W,W+8) zero guard
    """
    cdt = mid_ref.dtype
    r = pl.program_id(1)
    n_rt = pl.num_programs(1)

    # ---- conv1: one dense matmul (im2col was hoisted to the wrapper). ----
    acc1 = jnp.dot(p_ref[0, 0], w1_ref[...], preferred_element_type=jnp.float32)
    y1 = jnp.maximum(acc1 * sb_ref[0:1, :] + sb_ref[1:2, :], 0.0)     # f32 epilogue

    # ---- stage y1 (TH+2 rows incl. halo) into scratch; zero the guard columns. ----
    mid_ref[:, 0:W, :] = y1.astype(cdt).reshape(TH + 2, W, C_PAD)
    mid_ref[:, W:W + 8, :] = jnp.zeros((TH + 2, 8, C_PAD), cdt)

    # conv2's spatial zero padding: halo rows outside the image must be zero.
    @pl.when(r == 0)
    def _():
        mid_ref[0] = jnp.zeros((W + 8, C_PAD), cdt)

    @pl.when(r == n_rt - 1)
    def _():
        mid_ref[TH + 1] = jnp.zeros((W + 8, C_PAD), cdt)

    # ---- conv2: per-dy accumulating matmuls (paired K=2*C_PAD + single K=C_PAD).
    #      dx shifts realized via sublane rolls against the zero guard columns, so
    #      every load from the scratch is 8-aligned. ----
    acc2 = jnp.zeros((TH * W, C_PAD), jnp.float32)
    for dy in range(3):                                    # short, unrolled
        slab = mid_ref[dy:dy + TH]                         # (TH, W+8, C_PAD) aligned
        center = slab[:, 0:W, :]                           # dx = 1 (col w)
        left = pltpu.roll(slab, shift=1, axis=1)[:, 0:W, :]        # dx = 0 (col w-1)
        right = pltpu.roll(slab, shift=W + 7, axis=1)[:, 0:W, :]   # dx = 2 (== -1 mod W+8)
        lhs01 = jnp.concatenate([left, center], axis=-1)   # lane-aligned 128+128 concat
        acc2 = acc2 + jnp.dot(
            lhs01.reshape(TH * W, 2 * C_PAD),
            w2_ref[(3 * dy) * C_PAD:(3 * dy + 2) * C_PAD, :],
            preferred_element_type=jnp.float32)
        acc2 = acc2 + jnp.dot(
            right.reshape(TH * W, C_PAD),
            w2_ref[(3 * dy + 2) * C_PAD:(3 * dy + 3) * C_PAD, :],
            preferred_element_type=jnp.float32)

    y2 = jnp.maximum(acc2 * sb_ref[2:3, :] + sb_ref[3:4, :], 0.0)     # f32 epilogue
    o_ref[0] = y2.astype(o_ref.dtype)


def _round_up(v, m):
    return ((v + m - 1) // m) * m


def double_conv_pallas(x_nchw, w1_pt, scale1, bias1, w2_pt, scale2, bias2,
                       compute_dtype=jnp.bfloat16, row_tile=32):
    """DoubleConv forward.  x_nchw: (N, Cin, H, W); w*_pt: PyTorch OIHW weights."""
    N, Cin, H, W = x_nchw.shape
    C = w1_pt.shape[0]
    assert W % 8 == 0, "W must be a multiple of 8 (sublane alignment)"

    C_PAD = _round_up(C, 128)
    K1 = 9 * Cin
    K1_PAD = _round_up(K1, 128)

    TH = min(row_tile, H)
    while H % TH:                          # largest row tile <= row_tile dividing H
        TH -= 1
    n_rt = H // TH

    itm = np.dtype(compute_dtype).itemsize

    # ---- wrapper-side im2col for conv1 (small Cin path). Patches cover the
    # conv2-halo-extended y1 row grid g in [-1, H]; out-of-image halo rows are
    # zeroed in-kernel. x is padded by 2 so every tap slice is in-bounds. ----
    x_nhwc = jnp.transpose(x_nchw, (0, 2, 3, 1))
    x_p = jnp.pad(x_nhwc, ((0, 0), (2, 2), (2, 2), (0, 0)))
    taps = [x_p[:, dy:dy + H + 2, 1 + dx:1 + dx + W, :]
            for dy in range(3) for dx in range(3)]
    patches = jnp.concatenate(taps, axis=-1)                 # (N, H+2, W, 9*Cin)
    tiles = [patches[:, r * TH:r * TH + TH + 2] for r in range(n_rt)]
    patches_t = jnp.stack(tiles, axis=1).reshape(N, n_rt, (TH + 2) * W, K1)
    patches_t = jnp.pad(
        patches_t, ((0, 0), (0, 0), (0, 0), (0, K1_PAD - K1))).astype(compute_dtype)

    # conv1 weights: OIHW -> (kh, kw, cin, cout) -> (9*Cin, C); pad K and cout.
    w1 = jnp.transpose(w1_pt, (2, 3, 1, 0)).reshape(K1, C)
    w1 = jnp.pad(w1, ((0, K1_PAD - K1), (0, C_PAD - C))).astype(compute_dtype)

    # conv2 weights: pad both channel dims, flatten taps (tap, cin)-major.
    w2 = jnp.transpose(w2_pt, (2, 3, 1, 0))
    w2 = jnp.pad(w2, ((0, 0), (0, 0), (0, C_PAD - C), (0, C_PAD - C)))
    w2 = w2.reshape(9 * C_PAD, C_PAD).astype(compute_dtype)

    # Folded BN scale/bias table; padded channels get 0 scale/bias -> stay 0.
    sb = jnp.stack([scale1, bias1, scale2, bias2], axis=0)
    sb = jnp.pad(sb, ((0, 0), (0, C_PAD - C))).astype(jnp.float32)

    kernel = functools.partial(_double_conv_kernel, TH=TH, W=W, C_PAD=C_PAD)

    # Per-step VMEM footprint: double-buffered blocks + scratch + f32 temporaries.
    per_step = (
        2 * (TH + 2) * W * K1_PAD * itm        # patches block
        + 2 * K1_PAD * C_PAD * itm             # w1
        + 2 * 9 * C_PAD * C_PAD * itm          # w2
        + 2 * 4 * C_PAD * 4                    # sb
        + 2 * TH * W * C_PAD * itm             # output block
        + (TH + 2) * (W + 8) * C_PAD * itm     # mid scratch
        + (TH + 2) * W * C_PAD * 4             # y1 (f32)
        + 2 * TH * W * C_PAD * 4               # acc2 / y2 (f32)
        + TH * W * 2 * C_PAD * itm             # paired matmul LHS
    )
    vmem_limit = min(int(1.5 * per_step) + (8 << 20), 64 << 20)

    flops = 2 * N * H * W * (K1_PAD * C_PAD + 9 * C_PAD * C_PAD)
    bytes_accessed = (N * n_rt * (TH + 2) * W * K1_PAD * itm       # patches
                      + N * n_rt * (K1_PAD + 9 * C_PAD) * C_PAD * itm  # weights/step
                      + N * n_rt * 4 * C_PAD * 4                   # BN table/step
                      + N * H * W * C_PAD * itm)                   # output

    out_flat = pl.pallas_call(
        kernel,
        out_shape=jax.ShapeDtypeStruct((N, H * W, C_PAD), compute_dtype),
        grid_spec=pltpu.PrefetchScalarGridSpec(
            num_scalar_prefetch=0,
            grid=(N, n_rt),
            in_specs=[
                pl.BlockSpec((1, 1, (TH + 2) * W, K1_PAD),
                             lambda n, r: (n, r, 0, 0)),
                pl.BlockSpec((K1_PAD, C_PAD), lambda n, r: (0, 0)),
                pl.BlockSpec((4, C_PAD), lambda n, r: (0, 0)),
                pl.BlockSpec((9 * C_PAD, C_PAD), lambda n, r: (0, 0)),
            ],
            out_specs=pl.BlockSpec((1, TH * W, C_PAD), lambda n, r: (n, r, 0)),
            scratch_shapes=[pltpu.VMEM((TH + 2, W + 8, C_PAD), compute_dtype)],
        ),
        compiler_params=pltpu.CompilerParams(
            dimension_semantics=("parallel", "parallel"),
            vmem_limit_bytes=vmem_limit),
        cost_estimate=pl.CostEstimate(flops=flops, transcendentals=0,
                                      bytes_accessed=bytes_accessed),
    )(patches_t, w1, sb, w2)

    # Lane-dense (N, H*W, C_PAD) slab -> NCHW with the real channel count.
    # TODO(synk): when C << 128 on bandwidth-poor chips (v5e), pack spatial tiles
    # into the lane dim instead of carrying C_PAD channel padding through HBM.
    out = out_flat.reshape(N, H, W, C_PAD)[..., :C]
    return jnp.transpose(out, (0, 3, 1, 2)).astype(x_nchw.dtype)


def _fold_bn(gamma, beta, running_mean, running_var, eps=1e-5):
    scale = gamma / jnp.sqrt(running_var + eps)
    bias = beta - running_mean * scale
    return scale, bias


def _reference(x_nchw, w1_pt, s1, b1, w2_pt, s2, b2):
    """Plain-JAX reference (lax.conv) for correctness checking."""
    dn = ("NCHW", "OIHW", "NCHW")
    y = lax.conv_general_dilated(x_nchw, w1_pt, (1, 1), "SAME",
                                 dimension_numbers=dn)
    y = jnp.maximum(y * s1[None, :, None, None] + b1[None, :, None, None], 0.0)
    y = lax.conv_general_dilated(y, w2_pt, (1, 1), "SAME",
                                 dimension_numbers=dn)
    y = jnp.maximum(y * s2[None, :, None, None] + b2[None, :, None, None], 0.0)
    return y


if __name__ == "__main__":
    N, Cin, H, W = 2, 4, 16, 16
    Cout = 8

    key = jax.random.PRNGKey(0)
    k = jax.random.split(key, 12)

    x = jax.random.normal(k[0], (N, Cin, H, W), jnp.float32)

    # Conv weights in PyTorch OIHW shape, bias=False.
    w1_pt = 0.2 * jax.random.normal(k[1], (Cout, Cin, 3, 3), jnp.float32)
    w2_pt = 0.2 * jax.random.normal(k[2], (Cout, Cout, 3, 3), jnp.float32)

    # BatchNorm parameters (eval-mode running stats), deterministic.
    g1 = 1.0 + 0.1 * jax.random.normal(k[3], (Cout,), jnp.float32)
    be1 = 0.1 * jax.random.normal(k[4], (Cout,), jnp.float32)
    rm1 = 0.1 * jax.random.normal(k[5], (Cout,), jnp.float32)
    rv1 = 0.5 + jnp.abs(jax.random.normal(k[6], (Cout,), jnp.float32))
    g2 = 1.0 + 0.1 * jax.random.normal(k[7], (Cout,), jnp.float32)
    be2 = 0.1 * jax.random.normal(k[8], (Cout,), jnp.float32)
    rm2 = 0.1 * jax.random.normal(k[9], (Cout,), jnp.float32)
    rv2 = 0.5 + jnp.abs(jax.random.normal(k[10], (Cout,), jnp.float32))

    s1, b1 = _fold_bn(g1, be1, rm1, rv1)
    s2, b2 = _fold_bn(g2, be2, rm2, rv2)

    ref = _reference(x, w1_pt, s1, b1, w2_pt, s2, b2)

    # f32 path: tight correctness check; row_tile=8 exercises the 2-row halo logic.
    out_f32 = double_conv_pallas(x, w1_pt, s1, b1, w2_pt, s2, b2,
                                 compute_dtype=jnp.float32, row_tile=8)
    out_f32 = jax.block_until_ready(out_f32)
    assert out_f32.shape == (N, Cout, H, W), out_f32.shape
    assert jnp.allclose(out_f32, ref, atol=2e-4, rtol=2e-4), float(
        jnp.max(jnp.abs(out_f32 - ref)))

    # bf16 default path (MXU-native matmul operands on v5e/v6e/v7x): looser check.
    out_bf16 = double_conv_pallas(x, w1_pt, s1, b1, w2_pt, s2, b2, row_tile=8)
    out_bf16 = jax.block_until_ready(out_bf16)
    assert out_bf16.shape == (N, Cout, H, W), out_bf16.shape
    assert jnp.allclose(out_bf16, ref, atol=1e-1, rtol=1e-1), float(
        jnp.max(jnp.abs(out_bf16 - ref)))

    print("KERNEL_OK")
</pallas_src>

<mosaic_0001>
module attributes {stable_mosaic.version = 11 : i64} {
  func.func @_double_conv_kernel(%arg0: i32, %arg1: i32, %arg2: memref<1x1x160x128xf32, #tpu.memory_space<vmem>>, %arg3: memref<128x128xf32, #tpu.memory_space<vmem>>, %arg4: memref<4x128xf32, #tpu.memory_space<vmem>>, %arg5: memref<1152x128xf32, #tpu.memory_space<vmem>>, %arg6: memref<1x128x128xf32, #tpu.memory_space<vmem>>, %arg7: memref<10x24x128xf32, #tpu.memory_space<vmem>>) attributes {dimension_semantics = [#tpu.dimension_semantics<parallel>, #tpu.dimension_semantics<parallel>], iteration_bounds = array<i64: 2, 2>, scalar_prefetch = 0 : i64, scratch_operands = 1 : i64, tpu.core_type = #tpu.core_type<tc>, window_params = [{transform_indices = @transform_0, window_bounds = array<i64: 1, 1, 160, 128>}, {pipeline_mode = #tpu.pipeline_mode<synchronous>, transform_indices = @transform_1, window_bounds = array<i64: 128, 128>}, {pipeline_mode = #tpu.pipeline_mode<synchronous>, transform_indices = @transform_2, window_bounds = array<i64: 4, 128>}, {pipeline_mode = #tpu.pipeline_mode<synchronous>, transform_indices = @transform_3, window_bounds = array<i64: 1152, 128>}, {transform_indices = @transform_4, window_bounds = array<i64: 1, 128, 128>}]} {
    %c0 = arith.constant 0 : index
    %c0_0 = arith.constant 0 : index
    %c0_1 = arith.constant 0 : index
    %c0_2 = arith.constant 0 : index
    %0 = vector.load %arg2[%c0, %c0_0, %c0_1, %c0_2] : memref<1x1x160x128xf32, #tpu.memory_space<vmem>>, vector<1x1x160x128xf32>
    %1 = vector.shape_cast %0 : vector<1x1x160x128xf32> to vector<160x128xf32>
    %c0_3 = arith.constant 0 : index
    %c0_4 = arith.constant 0 : index
    %2 = vector.load %arg3[%c0_3, %c0_4] : memref<128x128xf32, #tpu.memory_space<vmem>>, vector<128x128xf32>
    %cst = arith.constant dense<0.000000e+00> : vector<160x128xf32>
    %3 = tpu.matmul %1, %2, %cst {dimension_numbers = #tpu.dot_dimension_numbers<[1], [0], [0], [1], [0, 0, 1, 1], [], []>} : vector<160x128xf32>, vector<128x128xf32>, vector<160x128xf32> -> vector<160x128xf32>
    %c0_5 = arith.constant 0 : index
    %c0_6 = arith.constant 0 : index
    %4 = vector.load %arg4[%c0_5, %c0_6] : memref<4x128xf32, #tpu.memory_space<vmem>>, vector<1x128xf32>
    %5 = vector.broadcast %4 : vector<1x128xf32> to vector<160x128xf32>
    %6 = arith.mulf %3, %5 : vector<160x128xf32>
    %c1 = arith.constant 1 : index
    %c0_7 = arith.constant 0 : index
    %7 = vector.load %arg4[%c1, %c0_7] : memref<4x128xf32, #tpu.memory_space<vmem>>, vector<1x128xf32>
    %8 = vector.broadcast %7 : vector<1x128xf32> to vector<160x128xf32>
    %9 = arith.addf %6, %8 : vector<160x128xf32>
    %cst_8 = arith.constant 0.000000e+00 : f32
    %10 = vector.broadcast %cst_8 : f32 to vector<160x128xf32>
    %11 = arith.maximumf %9, %10 : vector<160x128xf32>
    %12 = vector.shape_cast %11 : vector<160x128xf32> to vector<10x16x128xf32>
    %c0_9 = arith.constant 0 : index
    %c0_10 = arith.constant 0 : index
    %c0_11 = arith.constant 0 : index
    %13 = vector.load %arg7[%c0_9, %c0_10, %c0_11] : memref<10x24x128xf32, #tpu.memory_space<vmem>>, vector<10x16x128xf32>
    tpu.vector_store %arg7[%c0_9, %c0_10, %c0_11], %12 {strides = array<i32>} : memref<10x24x128xf32, #tpu.memory_space<vmem>>, vector<10x16x128xf32>,
    %cst_12 = arith.constant 0.000000e+00 : f32
    %14 = vector.broadcast %cst_12 : f32 to vector<10x8x128xf32>
    %c0_13 = arith.constant 0 : index
    %c16 = arith.constant 16 : index
    %c0_14 = arith.constant 0 : index
    %15 = vector.load %arg7[%c0_13, %c16, %c0_14] : memref<10x24x128xf32, #tpu.memory_space<vmem>>, vector<10x8x128xf32>
    tpu.vector_store %arg7[%c0_13, %c16, %c0_14], %14 {strides = array<i32>} : memref<10x24x128xf32, #tpu.memory_space<vmem>>, vector<10x8x128xf32>,
    %c0_i32 = arith.constant 0 : i32
    %16 = arith.cmpi eq, %arg1, %c0_i32 : i32
    %17 = arith.extui %16 : i1 to i32
    %c0_i32_15 = arith.constant 0 : i32
    %18 = arith.cmpi ne, %17, %c0_i32_15 : i32
    scf.if %18 {
      %cst_51 = arith.constant 0.000000e+00 : f32
      %79 = vector.broadcast %cst_51 : f32 to vector<24x128xf32>
      %c0_52 = arith.constant 0 : index
      %c0_53 = arith.constant 0 : index
      %c0_54 = arith.constant 0 : index
      %80 = vector.load %arg7[%c0_52, %c0_53, %c0_54] : memref<10x24x128xf32, #tpu.memory_space<vmem>>, vector<1x24x128xf32>
      %81 = vector.shape_cast %80 : vector<1x24x128xf32> to vector<24x128xf32>
      %82 = vector.shape_cast %79 : vector<24x128xf32> to vector<1x24x128xf32>
      tpu.vector_store %arg7[%c0_52, %c0_53, %c0_54], %82 {strides = array<i32>} : memref<10x24x128xf32, #tpu.memory_space<vmem>>, vector<1x24x128xf32>,
    } else {
    }
    %c1_i32 = arith.constant 1 : i32
    %19 = arith.cmpi eq, %arg1, %c1_i32 : i32
    %20 = arith.extui %19 : i1 to i32
    %c0_i32_16 = arith.constant 0 : i32
    %21 = arith.cmpi ne, %20, %c0_i32_16 : i32
    scf.if %21 {
      %cst_51 = arith.constant 0.000000e+00 : f32
      %79 = vector.broadcast %cst_51 : f32 to vector<24x128xf32>
      %c9 = arith.constant 9 : index
      %c0_52 = arith.constant 0 : index
      %c0_53 = arith.constant 0 : index
      %80 = vector.load %arg7[%c9, %c0_52, %c0_53] : memref<10x24x128xf32, #tpu.memory_space<vmem>>, vector<1x24x128xf32>
      %81 = vector.shape_cast %80 : vector<1x24x128xf32> to vector<24x128xf32>
      %82 = vector.shape_cast %79 : vector<24x128xf32> to vector<1x24x128xf32>
      tpu.vector_store %arg7[%c9, %c0_52, %c0_53], %82 {strides = array<i32>} : memref<10x24x128xf32, #tpu.memory_space<vmem>>, vector<1x24x128xf32>,
    } else {
    }
    %cst_17 = arith.constant 0.000000e+00 : f32
    %22 = vector.broadcast %cst_17 : f32 to vector<128x128xf32>
    %c0_18 = arith.constant 0 : index
    %c0_19 = arith.constant 0 : index
    %c0_20 = arith.constant 0 : index
    %23 = vector.load %arg7[%c0_18, %c0_19, %c0_20] : memref<10x24x128xf32, #tpu.memory_space<vmem>>, vector<8x24x128xf32>
    %24 = vector.extract_strided_slice %23 {offsets = [0, 0, 0], sizes = [8, 16, 128], strides = [1, 1, 1]} : vector<8x24x128xf32> to vector<8x16x128xf32>
    %c1_i32_21 = arith.constant 1 : i32
    %25 = tpu.dynamic_rotate %23 by %c1_i32_21 dim 1 : vector<8x24x128xf32>, i32 -> vector<8x24x128xf32>
    %26 = vector.extract_strided_slice %25 {offsets = [0, 0, 0], sizes = [8, 16, 128], strides = [1, 1, 1]} : vector<8x24x128xf32> to vector<8x16x128xf32>
    %c23_i32 = arith.constant 23 : i32
    %27 = tpu.dynamic_rotate %23 by %c23_i32 dim 1 : vector<8x24x128xf32>, i32 -> vector<8x24x128xf32>
    %28 = vector.extract_strided_slice %27 {offsets = [0, 0, 0], sizes = [8, 16, 128], strides = [1, 1, 1]} : vector<8x24x128xf32> to vector<8x16x128xf32>
    %29 = tpu.concatenate %26, %24 in 2 : vector<8x16x128xf32>, vector<8x16x128xf32> -> vector<8x16x256xf32>
    %30 = vector.shape_cast %29 : vector<8x16x256xf32> to vector<128x256xf32>
    %c0_22 = arith.constant 0 : index
    %c0_23 = arith.constant 0 : index
    %31 = vector.load %arg5[%c0_22, %c0_23] : memref<1152x128xf32, #tpu.memory_space<vmem>>, vector<256x128xf32>
    %cst_24 = arith.constant dense<0.000000e+00> : vector<128x128xf32>
    %32 = tpu.matmul %30, %31, %cst_24 {dimension_numbers = #tpu.dot_dimension_numbers<[1], [0], [0], [1], [0, 0, 1, 1], [], []>} : vector<128x256xf32>, vector<256x128xf32>, vector<128x128xf32> -> vector<128x128xf32>
    %33 = arith.addf %22, %32 : vector<128x128xf32>
    %34 = vector.shape_cast %28 : vector<8x16x128xf32> to vector<128x128xf32>
    %c256 = arith.constant 256 : index
    %c0_25 = arith.constant 0 : index
    %35 = vector.load %arg5[%c256, %c0_25] : memref<1152x128xf32, #tpu.memory_space<vmem>>, vector<128x128xf32>
    %cst_26 = arith.constant dense<0.000000e+00> : vector<128x128xf32>
    %36 = tpu.matmul %34, %35, %cst_26 {dimension_numbers = #tpu.dot_dimension_numbers<[1], [0], [0], [1], [0, 0, 1, 1], [], []>} : vector<128x128xf32>, vector<128x128xf32>, vector<128x128xf32> -> vector<128x128xf32>
    %37 = arith.addf %33, %36 : vector<128x128xf32>
    %c1_27 = arith.constant 1 : index
    %c0_28 = arith.constant 0 : index
    %c0_29 = arith.constant 0 : index
    %38 = vector.load %arg7[%c1_27, %c0_28, %c0_29] : memref<10x24x128xf32, #tpu.memory_space<vmem>>, vector<8x24x128xf32>
    %39 = vector.extract_strided_slice %38 {offsets = [0, 0, 0], sizes = [8, 16, 128], strides = [1, 1, 1]} : vector<8x24x128xf32> to vector<8x16x128xf32>
    %c1_i32_30 = arith.constant 1 : i32
    %40 = tpu.dynamic_rotate %38 by %c1_i32_30 dim 1 : vector<8x24x128xf32>, i32 -> vector<8x24x128xf32>
    %41 = vector.extract_strided_slice %40 {offsets = [0, 0, 0], sizes = [8, 16, 128], strides = [1, 1, 1]} : vector<8x24x128xf32> to vector<8x16x128xf32>
    %c23_i32_31 = arith.constant 23 : i32
    %42 = tpu.dynamic_rotate %38 by %c23_i32_31 dim 1 : vector<8x24x128xf32>, i32 -> vector<8x24x128xf32>
    %43 = vector.extract_strided_slice %42 {offsets = [0, 0, 0], sizes = [8, 16, 128], strides = [1, 1, 1]} : vector<8x24x128xf32> to vector<8x16x128xf32>
    %44 = tpu.concatenate %41, %39 in 2 : vector<8x16x128xf32>, vector<8x16x128xf32> -> vector<8x16x256xf32>
    %45 = vector.shape_cast %44 : vector<8x16x256xf32> to vector<128x256xf32>
    %c384 = arith.constant 384 : index
    %c0_32 = arith.constant 0 : index
    %46 = vector.load %arg5[%c384, %c0_32] : memref<1152x128xf32, #tpu.memory_space<vmem>>, vector<256x128xf32>
    %cst_33 = arith.constant dense<0.000000e+00> : vector<128x128xf32>
    %47 = tpu.matmul %45, %46, %cst_33 {dimension_numbers = #tpu.dot_dimension_numbers<[1], [0], [0], [1], [0, 0, 1, 1], [], []>} : vector<128x256xf32>, vector<256x128xf32>, vector<128x128xf32> -> vector<128x128xf32>
    %48 = arith.addf %37, %47 : vector<128x128xf32>
    %49 = vector.shape_cast %43 : vector<8x16x128xf32> to vector<128x128xf32>
    %c640 = arith.constant 640 : index
    %c0_34 = arith.constant 0 : index
    %50 = vector.load %arg5[%c640, %c0_34] : memref<1152x128xf32, #tpu.memory_space<vmem>>, vector<128x128xf32>
    %cst_35 = arith.constant dense<0.000000e+00> : vector<128x128xf32>
    %51 = tpu.matmul %49, %50, %cst_35 {dimension_numbers = #tpu.dot_dimension_numbers<[1], [0], [0], [1], [0, 0, 1, 1], [], []>} : vector<128x128xf32>, vector<128x128xf32>, vector<128x128xf32> -> vector<128x128xf32>
    %52 = arith.addf %48, %51 : vector<128x128xf32>
    %c2 = arith.constant 2 : index
    %c0_36 = arith.constant 0 : index
    %c0_37 = arith.constant 0 : index
    %53 = vector.load %arg7[%c2, %c0_36, %c0_37] : memref<10x24x128xf32, #tpu.memory_space<vmem>>, vector<8x24x128xf32>
    %54 = vector.extract_strided_slice %53 {offsets = [0, 0, 0], sizes = [8, 16, 128], strides = [1, 1, 1]} : vector<8x24x128xf32> to vector<8x16x128xf32>
    %c1_i32_38 = arith.constant 1 : i32
    %55 = tpu.dynamic_rotate %53 by %c1_i32_38 dim 1 : vector<8x24x128xf32>, i32 -> vector<8x24x128xf32>
    %56 = vector.extract_strided_slice %55 {offsets = [0, 0, 0], sizes = [8, 16, 128], strides = [1, 1, 1]} : vector<8x24x128xf32> to vector<8x16x128xf32>
    %c23_i32_39 = arith.constant 23 : i32
    %57 = tpu.dynamic_rotate %53 by %c23_i32_39 dim 1 : vector<8x24x128xf32>, i32 -> vector<8x24x128xf32>
    %58 = vector.extract_strided_slice %57 {offsets = [0, 0, 0], sizes = [8, 16, 128], strides = [1, 1, 1]} : vector<8x24x128xf32> to vector<8x16x128xf32>
    %59 = tpu.concatenate %56, %54 in 2 : vector<8x16x128xf32>, vector<8x16x128xf32> -> vector<8x16x256xf32>
    %60 = vector.shape_cast %59 : vector<8x16x256xf32> to vector<128x256xf32>
    %c768 = arith.constant 768 : index
    %c0_40 = arith.constant 0 : index
    %61 = vector.load %arg5[%c768, %c0_40] : memref<1152x128xf32, #tpu.memory_space<vmem>>, vector<256x128xf32>
    %cst_41 = arith.constant dense<0.000000e+00> : vector<128x128xf32>
    %62 = tpu.matmul %60, %61, %cst_41 {dimension_numbers = #tpu.dot_dimension_numbers<[1], [0], [0], [1], [0, 0, 1, 1], [], []>} : vector<128x256xf32>, vector<256x128xf32>, vector<128x128xf32> -> vector<128x128xf32>
    %63 = arith.addf %52, %62 : vector<128x128xf32>
    %64 = vector.shape_cast %58 : vector<8x16x128xf32> to vector<128x128xf32>
    %c1024 = arith.constant 1024 : index
    %c0_42 = arith.constant 0 : index
    %65 = vector.load %arg5[%c1024, %c0_42] : memref<1152x128xf32, #tpu.memory_space<vmem>>, vector<128x128xf32>
    %cst_43 = arith.constant dense<0.000000e+00> : vector<128x128xf32>
    %66 = tpu.matmul %64, %65, %cst_43 {dimension_numbers = #tpu.dot_dimension_numbers<[1], [0], [0], [1], [0, 0, 1, 1], [], []>} : vector<128x128xf32>, vector<128x128xf32>, vector<128x128xf32> -> vector<128x128xf32>
    %67 = arith.addf %63, %66 : vector<128x128xf32>
    %c2_44 = arith.constant 2 : index
    %c0_45 = arith.constant 0 : index
    %68 = vector.load %arg4[%c2_44, %c0_45] : memref<4x128xf32, #tpu.memory_space<vmem>>, vector<1x128xf32>
    %69 = vector.broadcast %68 : vector<1x128xf32> to vector<128x128xf32>
    %70 = arith.mulf %67, %69 : vector<128x128xf32>
    %c3 = arith.constant 3 : index
    %c0_46 = arith.constant 0 : index
    %71 = vector.load %arg4[%c3, %c0_46] : memref<4x128xf32, #tpu.memory_space<vmem>>, vector<1x128xf32>
    %72 = vector.broadcast %71 : vector<1x128xf32> to vector<128x128xf32>
    %73 = arith.addf %70, %72 : vector<128x128xf32>
    %cst_47 = arith.constant 0.000000e+00 : f32
    %74 = vector.broadcast %cst_47 : f32 to vector<128x128xf32>
    %75 = arith.maximumf %73, %74 : vector<128x128xf32>
    %c0_48 = arith.constant 0 : index
    %c0_49 = arith.constant 0 : index
    %c0_50 = arith.constant 0 : index
    %76 = vector.load %arg6[%c0_48, %c0_49, %c0_50] : memref<1x128x128xf32, #tpu.memory_space<vmem>>, vector<1x128x128xf32>
    %77 = vector.shape_cast %76 : vector<1x128x128xf32> to vector<128x128xf32>
    %78 = vector.shape_cast %75 : vector<128x128xf32> to vector<1x128x128xf32>
    tpu.vector_store %arg6[%c0_48, %c0_49, %c0_50], %78 {strides = array<i32>} : memref<1x128x128xf32, #tpu.memory_space<vmem>>, vector<1x128x128xf32>,
    return
  }
  func.func @transform_0(%arg0: i32, %arg1: i32) -> (i32, i32, i32, i32) {
    %c0_i32 = arith.constant 0 : i32
    %c0_i32_0 = arith.constant 0 : i32
    %c0_i32_1 = arith.constant 0 : i32
    return %arg0, %arg1, %c0_i32, %c0_i32_0 : i32, i32, i32, i32
  }
  func.func @transform_1(%arg0: i32, %arg1: i32) -> (i32, i32) {
    %c0_i32 = arith.constant 0 : i32
    %c0_i32_0 = arith.constant 0 : i32
    %c0_i32_1 = arith.constant 0 : i32
    return %c0_i32, %c0_i32_0 : i32, i32
  }
  func.func @transform_2(%arg0: i32, %arg1: i32) -> (i32, i32) {
    %c0_i32 = arith.constant 0 : i32
    %c0_i32_0 = arith.constant 0 : i32
    %c0_i32_1 = arith.constant 0 : i32
    return %c0_i32, %c0_i32_0 : i32, i32
  }
  func.func @transform_3(%arg0: i32, %arg1: i32) -> (i32, i32) {
    %c0_i32 = arith.constant 0 : i32
    %c0_i32_0 = arith.constant 0 : i32
    %c0_i32_1 = arith.constant 0 : i32
    return %c0_i32, %c0_i32_0 : i32, i32
  }
  func.func @transform_4(%arg0: i32, %arg1: i32) -> (i32, i32, i32) {
    %c0_i32 = arith.constant 0 : i32
    %c0_i32_0 = arith.constant 0 : i32
    return %arg0, %arg1, %c0_i32 : i32, i32, i32
  }
}

</mosaic_0001>

<bundles_post_ra>
// kernel: tpu_custom_call.1
= control target key start
LH: loop header
LB: loop body
LE: loop exit
PB: predicated region body
PF: predicated region fallthrough
CT: control target
= control target key end

     0   :  { %s4150_s0 = inlined_call_operand.hbm [shape: f32[2,2,160,128], index: 0, kind: input, shape index: {}]   ;;  %s4151_s1 = inlined_call_operand.hbm [shape: f32[128,128], index: 1, kind: input, shape index: {}]   ;;  %s4152_s2 = inlined_call_operand.hbm [shape: f32[4,128], index: 2, kind: input, shape index: {}]   ;;  %s4153_s3 = inlined_call_operand.hbm [shape: f32[1152,128], index: 3, kind: input, shape index: {}]   ;;  %s4154_s4 = inlined_call_operand.hbm [shape: f32[2,256,128], index: 4, kind: output, shape index: {}]  }
   0x1   :  { %4165 = sst [smem:[#allocation37_spill]] %s4151_s1 }
   0x2   :  { %4166 = sst [smem:[#allocation38_spill]] %s4152_s2 }
   0x3   :  { %4167 = sst [smem:[#allocation39_spill]] %s4153_s3 }
   0x4   :  { %9 = vsyncpa [#allocation4], 0 }
   0x5   :  { %11 = vsyncpa [#allocation4 + $0x1], 0 }
   0x6   :  { %12 = vsyncpa [#allocation7], 0 }
   0x7   :  { %13 = vsyncpa [#allocation10], 0 }
   0x8   :  { %14 = vsyncpa [#allocation5], 0 }
   0x9   :  { %16 = vsyncpa [#allocation5 + $0x1], 0  ;;  %s3194_s15 = smov 0   ;;  %s3196_s16 = smov 0  }
   0xa   :  { %s3198_s17 = smov 0   ;;  %s3200_s18 = smov 0  }
   0xb   :  { %s3202_s19 = smov 0   ;;  %s3204_s20 = smov 0  }
   0xc   :  { %s3206_s21 = smov 0   ;;  %s3208_s22 = smov 0  }
   0xd LB: > { %4168 = sst [smem:[#allocation16_spill]] %s3151_s21  ;;  %s2198_s23 = sadd.s32 4294967295, %s3155_s22   ;;  %s3155_s22 = sphi %s3208_s22, %s22_s22   ;;  %s3151_s21 = sphi %s3206_s21, %s4226_s21   ;;  %s3147_s20 = sphi %s3204_s20, %s4231_s20   ;;  %s3143_s19 = sphi %s3202_s19, %s4224_s19   ;;  %s3139_s18 = sphi %s3200_s18, %s4230_s18   ;;  %s3135_s17 = sphi %s3198_s17, %s4229_s17   ;;  %s3131_s16 = sphi %s3196_s16, %s4228_s16   ;;  %s3127_s15 = sphi %s3194_s15, %s4227_s15  }
   0xe   : > { %s2199_s24 = sadd.s32 4294967294, %s3155_s22   ;;  %p56_p0 = scmp.ne.s32.totalorder %s3131_s16, %s3127_s15 }
   0xf   : > { %p3238_p1 = scmp.eq.s32.totalorder %s2198_s23, 0  ;;  %p3242_p2 = scmp.eq.s32.totalorder %s2198_s23, 3 }
  0x10   : > { %p151_p3 = scmp.eq.s32.totalorder %s2199_s24, 3  ;;  %p2200_p5 = scmp.ge.s32.totalorder %s3155_s22, 1 }
  0x11   : > { %s4169_s25 = scalar_select %p3238_p1, 1, 0 }
  0x12   : > { %p3248_p4 = por %p3238_p1, %p56_p0  ;;  %p3253_p6 = por %p151_p3, %p56_p0 }
  0x13   : > { %p158_p7 = scmp.lt.s32.totalorder %s3155_s22, 5  ;;  %s3157_s30 = smov [#allocation6]  }
  0x14   : > { %s4171_s27 = scalar_select %p3248_p4, 1, 0 }
  0x15   : > { %s4172_s28 = scalar_select %p3253_p6, 1, 0 }
  0x16   : > { %p3258_p8 = pnand %p2200_p5, %p158_p7  ;;  %s170_s5 = sshll.u32 %s3157_s30, 4  ;;  %s171_s5 = int_to_ptr.vmem [resolvable:$true] %s170_s5 }
  0x17   : > { %4173 = sst [smem:[#allocation17_spill]] %s4172_s28  ;;  %s3158_s7 = smov [#allocation8]  }
  0x18   : > { %s4174_s29 = scalar_select %p3258_p8, 1, 0 }
  0x19   : > { %p2845_p9 = pneg %p3258_p8  ;;  %s184_s8 = sshll.u32 %s3158_s7, 4  ;;  %s185_s8 = int_to_ptr.vmem [resolvable:$true] %s184_s8 }
  0x1a   : > { %s3159_s9 = smov [#allocation9]   ;;  %s2956_s11 = scalar_lea.vmem %s171_s5, 2048 }
  0x1b   : > { %p3266_p10 = pnand %p2845_p9, %p3238_p1  ;;  %s194_s10 = sshll.u32 %s3159_s9, 4  ;;  %s195_s10 = int_to_ptr.vmem [resolvable:$true] %s194_s10 }
  0x1c   : > { %p2957_p12 = scmp.ne.s32.totalorder %s171_s5, %s2956_s11  ;;  %p2964_p3 = scmp.lt.s32.totalorder %s171_s5, %s171_s5 }
  0x1d   : > { %p2947_p11 = pneg %p3266_p10  ;;  %p2965_p5 = scmp.lt.s32.totalorder %s2956_s11, %s2956_s11 }
  0x1f   : > { %p2959_p13 = pnand %p2957_p12, %p2947_p11  ;;  %p2966_p7 = por %p2965_p5, %p2964_p3 }
  0x21   : > { %p2960_p0 = pneg %p2959_p13 }
  0x23   : > { %p2967_p9 = pnand %p2966_p7, %p2960_p0 }
  0x25   : > { %2970 = shalt.err (!%p2967_p9)
}
  0x26   : > { %s4159_s12 = smov 128   ;;  %s4160_s13 = smov 8  }
  0x27   : > { %s4176_s1 = sld [smem:[#allocation37_spill]]  ;;  %s2982_s24 = scalar_lea.vmem %s185_s8, 64 }
  0x28   : > { %p2983_p12 = scmp.ne.s32.totalorder %s185_s8, %s2982_s24  ;;  %p2990_p0 = scmp.lt.s32.totalorder %s185_s8, %s185_s8 }
  0x29   : > { %p2991_p5 = scmp.lt.s32.totalorder %s2982_s24, %s2982_s24 }
  0x2a   : > { %p2985_p13 = pnand %p2983_p12, %p2947_p11 }
  0x2b   : > { %p2992_p7 = por %p2991_p5, %p2990_p0 }
  0x2c   : > { %p2986_p3 = pneg %p2985_p13 }
  0x2d   : > { %2848 = dma.hbm_to_vmem [thread:$0]  (!%p3266_p10), %s4176_s1, 2048, %s171_s5, [#allocation7], %s4159_s12, %s4159_s12, %s4160_s13  }
  0x2e   : > { %p2993_p9 = pnand %p2992_p7, %p2986_p3 }
  0x30   : > { %2996 = shalt.err (!%p2993_p9)
}
  0x31   : > { %s4177_s2 = sld [smem:[#allocation38_spill]]  ;;  %s3008_s5 = scalar_lea.vmem %s195_s10, 18432 }
  0x32   : > { %p3009_p6 = scmp.ne.s32.totalorder %s195_s10, %s3008_s5  ;;  %p3016_p13 = scmp.lt.s32.totalorder %s195_s10, %s195_s10 }
  0x33   : > { %p3017_p4 = scmp.lt.s32.totalorder %s3008_s5, %s3008_s5 }
  0x34   : > { %p3011_p1 = pnand %p3009_p6, %p2947_p11 }
  0x35   : > { %p3018_p8 = por %p3017_p4, %p3016_p13 }
  0x36   : > { %p3012_p12 = pneg %p3011_p1 }
  0x37   : > { %2851 = dma.hbm_to_vmem [thread:$0]  (!%p3266_p10), %s4177_s2, 64, %s185_s8, [#allocation7]  }
  0x38   : > { %p3019_p0 = pnand %p3018_p8, %p3012_p12 }
  0x3a   : > { %3022 = shalt.err (!%p3019_p0)
}
  0x3b   : > { %s4178_s3 = sld [smem:[#allocation39_spill]]  ;;  %s31_s6 = sadd.s32 1, %s3147_s20 }
  0x3c   : > { %p32_p1 = scmp.ge.s32.totalorder %s31_s6, 2  ;;  %s34_s8 = sadd.s32 1, %s3151_s21 }
  0x3d   : > { %s43_s14 = sadd.s32 1, %s3135_s17  ;;  %p50_p4 = scmp.ne.s32.totalorder %s3135_s17, %s3131_s16 }
  0x3e   : > { %s4233_s6 = smov (%p32_p1, %s31_s6), 0  ;;  %s4235_s8 = smov (!%p32_p1, %s34_s8), %s3151_s21 }
  0x3f   : > { %4179 = sst [smem:[#allocation18_spill]] %s4233_s6  ;;  %s39_s23 = ssub.s32 %s3147_s20, %s4233_s6 }
  0x40   : > { %p51_p6 = scmp.eq.s32.totalorder %s3155_s22, 0  ;;  %p36_p8 = scmp.ge.s32.totalorder %s4235_s8, 2 }
  0x41   : > { %2854 = dma.hbm_to_vmem [thread:$0]  (!%p3266_p10), %s4178_s3, 18432, %s195_s10, [#allocation10], %s4159_s12, %s4159_s12, %s4160_s13  }
  0x42   : > { %p3315_p11 = por %p3242_p2, %p50_p4  ;;  %p52_p10 = por %p51_p6, %p50_p4 }
  0x43   : > { %p2866_p3 = scmp.lt.s32.totalorder %s3155_s22, 4  ;;  %s4237_s8 = smov (%p36_p8, %s4235_s8), 0 }
  0x44   : > { %4181 = sst [smem:[#allocation19_spill]] %s4237_s8  ;;  %s208_s10 = sand.u32 1, %s3135_s17  }
  0x45   : > { %s2826_s30 = smul.u32 20, %s3147_s20  ;;  %s38_s7 = ssub.s32 %s3151_s21, %s4237_s8 }
  0x46   : > { %s40_s5 = sor.u32 %s39_s23, %s38_s7  ;;  %s2825_s9 = smul.u32 160, %s208_s10 }
  0x47   : > { %p41_p5 = scmp.eq.s32.totalorder %s40_s5, 0  ;;  %s2827_s11 = smul.u32 40, %s3151_s21 }
  0x48   : > { %p3327_p7 = pnand %p2866_p3, %p52_p10  ;;  %s212_s1 = scalar_lea.vmem [#allocation3], %s2825_s9 }
  0x49   : > { %s3332_s26 = scalar_select %p41_p5, %s3135_s17, %s43_s14  }
  0x4a   : > { %s218_s13 = sadd.s32 %s2827_s11, %s2826_s30  ;;  %s221_s2 = sshll.u32 %s212_s1, 4  ;;  %s222_s2 = int_to_ptr.vmem [resolvable:$true] %s221_s2 }
  0x4b   : > { %s2205_s3 = sshll.u32 %s218_s13, 7  ;;  %s209_s23 = scalar_lea.sflag [#allocation4], %s208_s10 }
  0x4c   : > { %s220_s8 = scalar_lea.hbm %s4150_s0, %s2205_s3  ;;  %p3025_p2 = pneg %p3327_p7 }
  0x4d   : > { %s3036_s7 = scalar_lea.vmem %s222_s2, 2560  ;;  %s3162_s5 = smov [#allocation3]  }
  0x4e   : > { %p3037_p9 = scmp.ne.s32.totalorder %s222_s2, %s3036_s7  ;;  %s3041_s21 = sshll.u32 %s3162_s5, 4  ;;  %s3042_s21 = int_to_ptr.vmem [resolvable:$false] %s3041_s21 }
  0x4f   : > { %s3043_s14 = scalar_lea.vmem %s3042_s21, 5120  ;;  %p3044_p0 = scmp.lt.s32.totalorder %s222_s2, %s3042_s21 }
  0x50   : > { %p3039_p12 = pnand %p3037_p9, %p3025_p2  ;;  %p3045_p1 = scmp.lt.s32.totalorder %s3043_s14, %s3036_s7 }
  0x52   : > { %p3040_p13 = pneg %p3039_p12  ;;  %p3046_p4 = por %p3045_p1, %p3044_p0 }
  0x54   : > { %p3047_p6 = pnand %p3046_p4, %p3040_p13 }
  0x56   : > { %3050 = shalt.err (!%p3047_p6)
}
  0x57   : > { %s4183_s1 = smov 8   ;;  %s4184_s3 = smov 128  }
  0x58   : > { %2858 = dma.hbm_to_vmem [thread:$0]  (!%p3327_p7), %s220_s8, 2560, %s222_s2, %s209_s23, %s4184_s3, %s4184_s3, %s4183_s1  }
  0x59   : > { %p4185_p8 = scmp.ne.s32.totalorder %s4174_s29, 0 }
  0x5b   : > { %233 = sbr.rel (%p4185_p8) target bundleno = 806 (0x326), region = 36 }
  0x60   : > { %s3347_s28 = sand.u32 1, %s3131_s16   ;;  %p4186_p10 = scmp.ne.s32.totalorder %s4171_s27, 0 }
  0x61   : > { %s2828_s21 = smul.u32 160, %s3347_s28  ;;  %s236_s13 = scalar_lea.sflag [#allocation4], %s3347_s28 }
  0x63   : > { %s3351_s6 = scalar_lea.vmem [#allocation3], %s2828_s21 }
  0x64   : > { %3110 = dma.done.wait (%p4186_p10), %s236_s13, 2560  }
  0x65   : > { %3112 = vsyncadd (%p4186_p10), %s236_s13, 4294964736  ;;  %p4187_p3 = scmp.ne.s32.totalorder %s4169_s25, 0 }
  0x67   : > { %3114 = dma.done.wait (%p4187_p3), [#allocation7], 2112  }
  0x68   : > { %3116 = vsyncadd (%p4187_p3), [#allocation7], 4294965184 }
  0x69   : > { %3118 = dma.done.wait (%p4187_p3), [#allocation10], 18432  }
  0x6a   : > { %3120 = vsyncadd (%p4187_p3), [#allocation10], 4294948864  ;;  %s2210_s2 = sshll.u32 %s3347_s28, 7  ;;  %v3163_v0 = vmov 0.0   ;;  %v312_v1 = vld [vmem:[#allocation6 + $0x78] sm:$0xff]  ;;  %v311_v2 = vld [vmem:[#allocation6 + $0x70] sm:$0xff] }
  0x6b   : > { %568 = vst [vmem:[#allocation2 + $0x50] sm:$0xff] %v3163_v0  ;;  %569 = vst [vmem:[#allocation2 + $0x38] sm:$0xff] %v3163_v0  ;;  %2595 = vmatprep.subr.mxu0 %v312_v1  ;;  %v310_v3 = vld [vmem:[#allocation6 + $0x68] sm:$0xff]  ;;  %v309_v4 = vld [vmem:[#allocation6 + $0x60] sm:$0xff]  ;;  %s3432_s25 = scalar_lea.vmem [#allocation11], %s2210_s2  ;;  %p2213_p5 = scmp.ne.s32.totalorder %s3139_s18, 0 }
  0x6c   : > { %570 = vst [vmem:[#allocation2 + $0xd8] sm:$0xff] %v3163_v0  ;;  %571 = vst [vmem:[#allocation2 + $0x10] sm:$0xff] %v3163_v0  ;;  %2596 = vmatpush3.msra.mxu0 %v312_v1  ;;  %v277_v5 = vld [vmem:[%s3351_s6] sm:$0xff]  ;;  %v308_v6 = vld [vmem:[#allocation6 + $0x58] sm:$0xff] }
  0x6d   : > { %572 = vst [vmem:[#allocation2 + $0x80] sm:$0xff] %v3163_v0  ;;  %573 = vst [vmem:[#allocation2 + $0xa0] sm:$0xff] %v3163_v0  ;;  %2597 = vmatprep.subr.mxu0 %v311_v2  ;;  %2627 = vmatprep.mubr.f32.mxu0 %v277_v5  ;;  %v307_v7 = vld [vmem:[#allocation6 + $0x50] sm:$0xff]  ;;  %v306_v8 = vld [vmem:[#allocation6 + $0x48] sm:$0xff] }
  0x6e   : > { %574 = vst [vmem:[#allocation2 + $0xe0] sm:$0xff] %v3163_v0  ;;  %575 = vst [vmem:[#allocation2 + $0x88] sm:$0xff] %v3163_v0  ;;  %2598 = vmatpush3.msra.mxu0 %v311_v2  ;;  %v305_v9 = vld [vmem:[#allocation6 + $0x40] sm:$0xff]  ;;  %v304_v10 = vld [vmem:[#allocation6 + $0x38] sm:$0xff] }
  0x6f   : > { %576 = vst [vmem:[#allocation2 + $0xd0] sm:$0xff] %v3163_v0  ;;  %577 = vst [vmem:[#allocation2 + $0x30] sm:$0xff] %v3163_v0  ;;  %2599 = vmatprep.subr.mxu0 %v310_v3  ;;  %v303_v11 = vld [vmem:[#allocation6 + $0x30] sm:$0xff]  ;;  %v302_v12 = vld [vmem:[#allocation6 + $0x28] sm:$0xff] }
  0x70   : > { %2600 = vmatpush3.msra.mxu0 %v310_v3  ;;  %v301_v13 = vld [vmem:[#allocation6 + $0x20] sm:$0xff]  ;;  %v300_v14 = vld [vmem:[#allocation6 + $0x18] sm:$0xff]  ;;  %v299_v15 = vld [vmem:[#allocation6 + $0x10] sm:$0xff] }
  0x71   : > { %2601 = vmatprep.subr.mxu0 %v309_v4  ;;  %v298_v16 = vld [vmem:[#allocation6 + $0x8] sm:$0xff]  ;;  %v297_v17 = vld [vmem:[#allocation6] sm:$0xff]  ;;  %v279_v19 = vld [vmem:[%s3351_s6 + $0x10] sm:$0xff] }
  0x72   : > { %2602 = vmatpush3.msra.mxu0 %v309_v4  ;;  %v278_v18 = vld [vmem:[%s3351_s6 + $0x8] sm:$0xff]  ;;  %v280_v20 = vld [vmem:[%s3351_s6 + $0x18] sm:$0xff]  ;;  %v281_v21 = vld [vmem:[%s3351_s6 + $0x20] sm:$0xff] }
  0x73   : > { %2603 = vmatprep.subr.mxu0 %v308_v6  ;;  %v282_v22 = vld [vmem:[%s3351_s6 + $0x28] sm:$0xff]  ;;  %v283_v23 = vld [vmem:[%s3351_s6 + $0x30] sm:$0xff]  ;;  %v284_v24 = vld [vmem:[%s3351_s6 + $0x38] sm:$0xff] }
  0x74   : > { %2604 = vmatpush3.msra.mxu0 %v308_v6  ;;  %v285_v25 = vld [vmem:[%s3351_s6 + $0x40] sm:$0xff]  ;;  %v286_v26 = vld [vmem:[%s3351_s6 + $0x48] sm:$0xff]  ;;  %v287_v27 = vld [vmem:[%s3351_s6 + $0x50] sm:$0xff] }
  0x75   : > { %2605 = vmatprep.subr.mxu0 %v307_v7  ;;  %v288_v28 = vld [vmem:[%s3351_s6 + $0x58] sm:$0xff]  ;;  %v289_v29 = vld [vmem:[%s3351_s6 + $0x60] sm:$0xff]  ;;  %v290_v30 = vld [vmem:[%s3351_s6 + $0x68] sm:$0xff] }
  0x76   : > { %2606 = vmatpush3.msra.mxu0 %v307_v7  ;;  %v291_v31 = vld [vmem:[%s3351_s6 + $0x70] sm:$0xff]  ;;  %v292_v32 = vld [vmem:[%s3351_s6 + $0x78] sm:$0xff]  ;;  %v293_v33 = vld [vmem:[%s3351_s6 + $0x80] sm:$0xff] }
  0x77   : > { %2607 = vmatprep.subr.mxu0 %v306_v8  ;;  %v294_v34 = vld [vmem:[%s3351_s6 + $0x88] sm:$0xff]  ;;  %v295_v35 = vld [vmem:[%s3351_s6 + $0x90] sm:$0xff]  ;;  %v296_v36 = vld [vmem:[%s3351_s6 + $0x98] sm:$0xff] }
  0x78   : > { %2608 = vmatpush3.msra.mxu0 %v306_v8  ;;  %v3386_v37 = vld [vmem:[#allocation8] ss:$0 sm:$0xff]  ;;  %v3388_v39 = vld [vmem:[#allocation8 + $0x1] ss:$0 sm:$0xff] }
  0x79   : > { %2609 = vmatprep.subr.mxu0 %v305_v9 }
  0x7a   : > { %2610 = vmatpush3.msra.mxu0 %v305_v9 }
  0x7b   : > { %2611 = vmatprep.subr.mxu0 %v304_v10 }
  0x7c   : > { %2612 = vmatpush3.msra.mxu0 %v304_v10 }
  0x7d   : > { %2613 = vmatprep.subr.mxu0 %v303_v11 }
  0x7e   : > { %2614 = vmatpush3.msra.mxu0 %v303_v11 }
  0x7f   : > { %2615 = vmatprep.subr.mxu0 %v302_v12 }
  0x80   : > { %2616 = vmatpush3.msra.mxu0 %v302_v12 }
  0x81   : > { %2617 = vmatprep.subr.mxu0 %v301_v13 }
  0x82   : > { %2618 = vmatpush3.msra.mxu0 %v301_v13 }
  0x83   : > { %2619 = vmatprep.subr.mxu0 %v300_v14 }
  0x84   : > { %2620 = vmatpush3.msra.mxu0 %v300_v14 }
  0x85   : > { %2621 = vmatprep.subr.mxu0 %v299_v15 }
  0x86   : > { %2622 = vmatpush3.msra.mxu0 %v299_v15 }
  0x87   : > { %2623 = vmatprep.subr.mxu0 %v298_v16 }
  0x88   : > { %2624 = vmatpush3.msra.mxu0 %v298_v16 }
  0x89   : > { %2625 = vmatprep.subr.mxu0 %v297_v17 }
  0x8a   : > { %2626 = vmatpush3.msra.mxu0 %v297_v17 }
  0x8b   : > { %2628 = vmatmul.mubr.f32.vlgmr.msra.gmra.mxu0 %v278_v18 }
  0x8c   : > { %2630 = vmatprep.mubr.f32.mxu0 %v279_v19 }
  0x8f   : > { %2631 = vmatmul.mubr.f32.gmra.mxu0 %v280_v20 }
  0x90   : > { %2633 = vmatprep.mubr.f32.mxu0 %v281_v21 }
  0x93   : > { %2634 = vmatmul.mubr.f32.gmra.mxu0 %v282_v22 }
  0x94   : > { %2636 = vmatprep.mubr.f32.mxu0 %v283_v23 }
  0x97   : > { %2637 = vmatmul.mubr.f32.gmra.mxu0 %v284_v24 }
  0x98   : > { %2639 = vmatprep.mubr.f32.mxu0 %v285_v25 }
  0x9b   : > { %2640 = vmatmul.mubr.f32.gmra.mxu0 %v286_v26 }
  0x9c   : > { %2642 = vmatprep.mubr.f32.mxu0 %v287_v27 }
  0x9f   : > { %2643 = vmatmul.mubr.f32.gmra.mxu0 %v288_v28 }
  0xa0   : > { %2645 = vmatprep.mubr.f32.mxu0 %v289_v29 }
  0xa3   : > { %2646 = vmatmul.mubr.f32.gmra.mxu0 %v290_v30 }
  0xa4   : > { %2648 = vmatprep.mubr.f32.mxu0 %v291_v31 }
  0xa7   : > { %2649 = vmatmul.mubr.f32.gmra.mxu0 %v292_v32 }
  0xa8   : > { %2651 = vmatprep.mubr.f32.mxu0 %v293_v33 }
  0xab   : > { %2652 = vmatmul.mubr.f32.gmra.mxu0 %v294_v34 }
  0xac   : > { %2654 = vmatprep.mubr.f32.mxu0 %v295_v35 }
  0xaf   : > { %2655 = vmatmul.mubr.f32.gmra.mxu0 %v296_v36 }
 0x14b   : > { %v2629_v38 = vpop.f32.mrf.mxu0 }
 0x14c   : > { %v484_v40 = vmul.f32 %v2629_v38, %v3386_v37 }
 0x14d   : > { %v379_v41 = vpop.f32.mrf.mxu0 }
 0x14e   : > { %v509_v42 = vadd.f32 %v3388_v39, %v484_v40  ;;  %v483_v43 = vmul.f32 %v3386_v37, %v379_v41 }
 0x14f   : > { %v2632_v44 = vpop.f32.mrf.mxu0 }
 0x150   : > { %v529_v45 = vmax.f32 %v509_v42, 0.0  ;;  %v508_v46 = vadd.f32 %v3388_v39, %v483_v43  ;;  %v486_v47 = vmul.f32 %v2632_v44, %v3386_v37 }
 0x151   : > { %v389_v48 = vpop.f32.mrf.mxu0 }
 0x152   : > { %549 = vst [vmem:[#allocation2] sm:$0xff] %v529_v45  ;;  %v528_v49 = vmax.f32 %v508_v46, 0.0  ;;  %v511_v50 = vadd.f32 %v3388_v39, %v486_v47  ;;  %v485_v51 = vmul.f32 %v3386_v37, %v389_v48 }
 0x153   : > { %v2635_v52 = vpop.f32.mrf.mxu0 }
 0x154   : > { %548 = vst [vmem:[#allocation2 + $0x40] sm:$0xff] %v528_v49  ;;  %v531_v53 = vmax.f32 %v511_v50, 0.0  ;;  %v510_v54 = vadd.f32 %v3388_v39, %v485_v51  ;;  %v488_v55 = vmul.f32 %v2635_v52, %v3386_v37 }
 0x155   : > { %v399_v56 = vpop.f32.mrf.mxu0 }
 0x156   : > { %551 = vst [vmem:[#allocation2 + $0x20] sm:$0xff] %v531_v53  ;;  %v530_v57 = vmax.f32 %v510_v54, 0.0  ;;  %v513_v58 = vadd.f32 %v3388_v39, %v488_v55  ;;  %v487_v59 = vmul.f32 %v3386_v37, %v399_v56 }
 0x157   : > { %v2638_v60 = vpop.f32.mrf.mxu0 }
 0x158   : > { %550 = vst [vmem:[#allocation2 + $0xb8] sm:$0xff] %v530_v57  ;;  %v533_v61 = vmax.f32 %v513_v58, 0.0  ;;  %v512_v62 = vadd.f32 %v3388_v39, %v487_v59  ;;  %v490_v63 = vmul.f32 %v2638_v60, %v3386_v37 }
 0x159   : > { %v409_v0 = vpop.f32.mrf.mxu0 }
 0x15a   : > { %553 = vst [vmem:[#allocation2 + $0x98] sm:$0xff] %v533_v61  ;;  %v532_v1 = vmax.f32 %v512_v62, 0.0  ;;  %v515_v2 = vadd.f32 %v3388_v39, %v490_v63  ;;  %v489_v3 = vmul.f32 %v3386_v37, %v409_v0 }
 0x15b   : > { %v2641_v4 = vpop.f32.mrf.mxu0 }
 0x15c   : > { %552 = vst [vmem:[#allocation2 + $0x78] sm:$0xff] %v532_v1  ;;  %v535_v5 = vmax.f32 %v515_v2, 0.0  ;;  %v514_v6 = vadd.f32 %v3388_v39, %v489_v3  ;;  %v492_v7 = vmul.f32 %v2641_v4, %v3386_v37 }
 0x15d   : > { %v419_v8 = vpop.f32.mrf.mxu0 }
 0x15e   : > { %555 = vst [vmem:[#allocation2 + $0x68] sm:$0xff] %v535_v5  ;;  %v534_v9 = vmax.f32 %v514_v6, 0.0  ;;  %v517_v10 = vadd.f32 %v3388_v39, %v492_v7  ;;  %v491_v11 = vmul.f32 %v3386_v37, %v419_v8 }
 0x15f   : > { %v2644_v12 = vpop.f32.mrf.mxu0 }
 0x160   : > { %554 = vst [vmem:[#allocation2 + $0x48] sm:$0xff] %v534_v9  ;;  %v537_v13 = vmax.f32 %v517_v10, 0.0  ;;  %v516_v14 = vadd.f32 %v3388_v39, %v491_v11  ;;  %v494_v15 = vmul.f32 %v2644_v12, %v3386_v37 }
 0x161   : > { %v429_v16 = vpop.f32.mrf.mxu0 }
 0x162   : > { %557 = vst [vmem:[#allocation2 + $0xc8] sm:$0xff] %v537_v13  ;;  %v536_v17 = vmax.f32 %v516_v14, 0.0  ;;  %v519_v18 = vadd.f32 %v3388_v39, %v494_v15  ;;  %v493_v19 = vmul.f32 %v3386_v37, %v429_v16 }
 0x163   : > { %v2647_v20 = vpop.f32.mrf.mxu0 }
 0x164   : > { %556 = vst [vmem:[#allocation2 + $0xc0] sm:$0xff] %v536_v17  ;;  %v539_v21 = vmax.f32 %v519_v18, 0.0  ;;  %v518_v22 = vadd.f32 %v3388_v39, %v493_v19  ;;  %v496_v23 = vmul.f32 %v2647_v20, %v3386_v37 }
 0x165   : > { %v439_v24 = vpop.f32.mrf.mxu0 }
 0x166   : > { %559 = vst [vmem:[#allocation2 + $0x58] sm:$0xff] %v539_v21  ;;  %v538_v25 = vmax.f32 %v518_v22, 0.0  ;;  %v521_v26 = vadd.f32 %v3388_v39, %v496_v23  ;;  %v495_v27 = vmul.f32 %v3386_v37, %v439_v24 }
 0x167   : > { %v2650_v28 = vpop.f32.mrf.mxu0 }
 0x168   : > { %558 = vst [vmem:[#allocation2 + $0xe8] sm:$0xff] %v538_v25  ;;  %v541_v29 = vmax.f32 %v521_v26, 0.0  ;;  %v520_v30 = vadd.f32 %v3388_v39, %v495_v27  ;;  %v498_v31 = vmul.f32 %v2650_v28, %v3386_v37 }
 0x169   : > { %v449_v32 = vpop.f32.mrf.mxu0 }
 0x16a   : > { %561 = vst [vmem:[#allocation2 + $0x28] sm:$0xff] %v541_v29  ;;  %v540_v33 = vmax.f32 %v520_v30, 0.0  ;;  %v523_v34 = vadd.f32 %v3388_v39, %v498_v31  ;;  %v497_v35 = vmul.f32 %v3386_v37, %v449_v32 }
 0x16b   : > { %v2653_v36 = vpop.f32.mrf.mxu0 }
 0x16c   : > { %560 = vst [vmem:[#allocation2 + $0x90] sm:$0xff] %v540_v33  ;;  %v543_v38 = vmax.f32 %v523_v34, 0.0  ;;  %v522_v40 = vadd.f32 %v3388_v39, %v497_v35  ;;  %v500_v41 = vmul.f32 %v2653_v36, %v3386_v37 }
 0x16d   : > { %v459_v42 = vpop.f32.mrf.mxu0 }
 0x16e   : > { %563 = vst [vmem:[#allocation2 + $0x60] sm:$0xff] %v543_v38  ;;  %v542_v43 = vmax.f32 %v522_v40, 0.0  ;;  %v525_v44 = vadd.f32 %v3388_v39, %v500_v41  ;;  %v499_v45 = vmul.f32 %v3386_v37, %v459_v42 }
 0x16f   : > { %v2656_v46 = vpop.f32.mrf.mxu0 }
 0x170   : > { %562 = vst [vmem:[#allocation2 + $0xa8] sm:$0xff] %v542_v43  ;;  %v545_v47 = vmax.f32 %v525_v44, 0.0  ;;  %v524_v48 = vadd.f32 %v3388_v39, %v499_v45  ;;  %v502_v49 = vmul.f32 %v2656_v46, %v3386_v37 }
 0x171   : > { %v469_v50 = vpop.f32.mrf.mxu0 }
 0x172   : > { %565 = vst [vmem:[#allocation2 + $0xb0] sm:$0xff] %v545_v47  ;;  %v544_v51 = vmax.f32 %v524_v48, 0.0  ;;  %v527_v52 = vadd.f32 %v3388_v39, %v502_v49  ;;  %v501_v53 = vmul.f32 %v3386_v37, %v469_v50 }
 0x174   : > { %564 = vst [vmem:[#allocation2 + $0x8] sm:$0xff] %v544_v51  ;;  %v547_v54 = vmax.f32 %v527_v52, 0.0  ;;  %v526_v55 = vadd.f32 %v3388_v39, %v501_v53  ;;  %581 = sbr.rel (%p2213_p5) target bundleno = 380 (0x17c), region = 56 }
 0x176   : > { %567 = vst [vmem:[#allocation2 + $0x18] sm:$0xff] %v547_v54  ;;  %v546_v56 = vmax.f32 %v526_v55, 0.0 }
 0x178   : > { %566 = vst [vmem:[#allocation2 + $0x70] sm:$0xff] %v546_v56 }
 0x179   : > { %v3164_v57 = vmov 0.0  }
 0x17a   : > { %582 = vst [vmem:[#allocation2 + $0x40] sm:$0xff] %v3164_v57  ;;  %583 = vst [vmem:[#allocation2] sm:$0xff] %v3164_v57 }
 0x17b   : > { %584 = vst [vmem:[#allocation2 + $0x50] sm:$0xff] %v3164_v57 }
 0x17c PF: > { %p2214_p7 = scmp.ne.s32.totalorder %s3139_s18, 1 }
 0x17e   : > { %588 = sbr.rel (%p2214_p7) target bundleno = 390 (0x186), region = 60 }
 0x183   : > { %v3165_v37 = vmov 0.0  }
 0x184   : > { %590 = vst [vmem:[#allocation2 + $0x70] sm:$0xff] %v3165_v37  ;;  %591 = vst [vmem:[#allocation2 + $0x18] sm:$0xff] %v3165_v37 }
 0x185   : > { %592 = vst [vmem:[#allocation2 + $0x30] sm:$0xff] %v3165_v37 }
 0x186 PF: > { %v748_v39 = vld [vmem:[#allocation9 + $0x178] sm:$0xff]  ;;  %v747_v60 = vld [vmem:[#allocation9 + $0x170] sm:$0xff]  ;;  %v746_v63 = vld [vmem:[#allocation9 + $0x168] sm:$0xff]  ;;  %v641_v25 = vlaneseq  ;;  %s2218_s27 = sshll.u32 %s3139_s18, 4  ;;  %s2219_s29 = sshll.u32 %s3143_s19, 5 }
 0x187   : > { %v1175_v58 = vld [vmem:[#allocation9 + $0x278] sm:$0xff]  ;;  %2657 = vmatprep.subr.mxu1 %v748_v39  ;;  %v1174_v61 = vld [vmem:[#allocation9 + $0x270] sm:$0xff]  ;;  %v1173_v0 = vld [vmem:[#allocation9 + $0x268] sm:$0xff]  ;;  %s2076_s12 = sadd.s32 %s2219_s29, %s2218_s27  ;;  %s2079_s19 = sshll.u32 %s3432_s25, 4  ;;  %s4095_s19 = int_to_ptr.vmem [resolvable:$true] %s2079_s19 }
 0x188   : > { %v1159_v59 = vld [vmem:[#allocation9 + $0x1f8] sm:$0xff]  ;;  %2371 = vmatprep.subr.mxu0 %v1175_v58  ;;  %v1158_v62 = vld [vmem:[#allocation9 + $0x1f0] sm:$0xff]  ;;  %2658 = vmatpush3.msra.mxu1 %v748_v39  ;;  %v1157_v1 = vld [vmem:[#allocation9 + $0x1e8] sm:$0xff]  ;;  %v3440_v34 = vshrl.u32 %v641_v25, 7  ;;  %s2220_s18 = sshll.u32 %s2076_s12, 7  ;;  %s2064_s9 = scalar_lea.sflag [#allocation5], %s3347_s28 }
 0x189   : > { %2372 = vmatpush3.msra.mxu0 %v1159_v59  ;;  %2659 = vmatprep.subr.mxu1 %v747_v60  ;;  %v745_v2 = vld [vmem:[#allocation9 + $0x160] sm:$0xff]  ;;  %v744_v5 = vld [vmem:[#allocation9 + $0x158] sm:$0xff]  ;;  %v743_v8 = vld [vmem:[#allocation9 + $0x150] sm:$0xff]  ;;  %s4093_s30 = scalar_lea.hbm %s4154_s4, %s2220_s18  ;;  %s3051_s11 = scalar_lea.vmem %s4095_s19, 2048 }
 0x18a   : > { %2373 = vmatprep.subr.mxu0 %v1174_v61  ;;  %2660 = vmatpush3.msra.mxu1 %v747_v60  ;;  %v1172_v3 = vld [vmem:[#allocation9 + $0x260] sm:$0xff]  ;;  %v1171_v6 = vld [vmem:[#allocation9 + $0x258] sm:$0xff]  ;;  %v1170_v9 = vld [vmem:[#allocation9 + $0x250] sm:$0xff]  ;;  %vm684_vm0 = vcmp.lt.s32.totalorder %v3440_v34, 7  ;;  %vm643_vm1 = vcmp.lt.s32.totalorder %v3440_v34, 1  ;;  %p3052_p2 = scmp.ne.s32.totalorder %s4095_s19, %s3051_s11  ;;  %s3166_s23 = smov [#allocation11]  }
 0x18b   : > { %2374 = vmatpush3.msra.mxu0 %v1158_v62  ;;  %2661 = vmatprep.subr.mxu1 %v746_v63  ;;  %v1156_v4 = vld [vmem:[#allocation9 + $0x1e0] sm:$0xff]  ;;  %v1155_v7 = vld [vmem:[#allocation9 + $0x1d8] sm:$0xff]  ;;  %v1154_v10 = vld [vmem:[#allocation9 + $0x1d0] sm:$0xff]  ;;  %s3055_s7 = sshll.u32 %s3166_s23, 4  ;;  %s3056_s7 = int_to_ptr.vmem [resolvable:$false] %s3055_s7 }
 0x18c   : > { %2375 = vmatprep.subr.mxu0 %v1173_v0  ;;  %2662 = vmatpush3.msra.mxu1 %v746_v63  ;;  %v742_v11 = vld [vmem:[#allocation9 + $0x148] sm:$0xff]  ;;  %v741_v14 = vld [vmem:[#allocation9 + $0x140] sm:$0xff]  ;;  %v740_v17 = vld [vmem:[#allocation9 + $0x138] sm:$0xff]  ;;  %p3053_p9 = pnand %p3052_p2, %p3315_p11  ;;  %s3057_s5 = scalar_lea.vmem %s3056_s7, 4096 }
 0x18d   : > { %2376 = vmatpush3.msra.mxu0 %v1157_v1  ;;  %2663 = vmatprep.subr.mxu1 %v745_v2  ;;  %v1169_v12 = vld [vmem:[#allocation9 + $0x248] sm:$0xff]  ;;  %v1168_v15 = vld [vmem:[#allocation9 + $0x240] sm:$0xff]  ;;  %v1167_v18 = vld [vmem:[#allocation9 + $0x238] sm:$0xff]  ;;  %p3058_p13 = scmp.lt.s32.totalorder %s4095_s19, %s3056_s7  ;;  %p3059_p0 = scmp.lt.s32.totalorder %s3057_s5, %s3051_s11 }
 0x18e   : > { %2377 = vmatprep.subr.mxu0 %v1172_v3  ;;  %2664 = vmatpush3.msra.mxu1 %v745_v2  ;;  %v1153_v13 = vld [vmem:[#allocation9 + $0x1c8] sm:$0xff]  ;;  %v1152_v16 = vld [vmem:[#allocation9 + $0x1c0] sm:$0xff]  ;;  %v1151_v19 = vld [vmem:[#allocation9 + $0x1b8] sm:$0xff]  ;;  %p3054_p12 = pneg %p3053_p9 }
 0x18f   : > { %2378 = vmatpush3.msra.mxu0 %v1156_v4  ;;  %2665 = vmatprep.subr.mxu1 %v744_v5  ;;  %v739_v20 = vld [vmem:[#allocation9 + $0x130] sm:$0xff]  ;;  %v738_v23 = vld [vmem:[#allocation9 + $0x128] sm:$0xff]  ;;  %v737_v27 = vld [vmem:[#allocation9 + $0x120] sm:$0xff]  ;;  %p3060_p1 = por %p3059_p0, %p3058_p13 }
 0x190   : > { %2379 = vmatprep.subr.mxu0 %v1171_v6  ;;  %2666 = vmatpush3.msra.mxu1 %v744_v5  ;;  %v1166_v21 = vld [vmem:[#allocation9 + $0x230] sm:$0xff]  ;;  %v1165_v24 = vld [vmem:[#allocation9 + $0x228] sm:$0xff]  ;;  %v1164_v28 = vld [vmem:[#allocation9 + $0x220] sm:$0xff] }
 0x191   : > { %2380 = vmatpush3.msra.mxu0 %v1155_v7  ;;  %2667 = vmatprep.subr.mxu1 %v743_v8  ;;  %v1150_v22 = vld [vmem:[#allocation9 + $0x1b0] sm:$0xff]  ;;  %v1149_v26 = vld [vmem:[#allocation9 + $0x1a8] sm:$0xff]  ;;  %v1148_v29 = vld [vmem:[#allocation9 + $0x1a0] sm:$0xff]  ;;  %p3061_p4 = pnand %p3060_p1, %p3054_p12 }
 0x192   : > { %2381 = vmatprep.subr.mxu0 %v1170_v9  ;;  %2668 = vmatpush3.msra.mxu1 %v743_v8  ;;  %v736_v30 = vld [vmem:[#allocation9 + $0x118] sm:$0xff]  ;;  %v3436_v32 = vld [vmem:[#allocation2 + $0x40] sm:$0xff]  ;;  %v3446_v44 = vld [vmem:[#allocation2 + $0xb8] sm:$0xff] }
 0x193   : > { %2382 = vmatpush3.msra.mxu0 %v1154_v10  ;;  %2669 = vmatprep.subr.mxu1 %v742_v11  ;;  %v1163_v31 = vld [vmem:[#allocation9 + $0x218] sm:$0xff]  ;;  %v3438_v33 = vld [vmem:[#allocation2] sm:$0xff]  ;;  %v660_v42 = vrot.slane %v3436_v32, 1  ;;  %v1042_v45 = vld [vmem:[#allocation2 + $0x38] sm:$0xff]  ;;  %v1064_v53 = vrot.slane %v3446_v44, 7  ;;  %v1104_v56 = vrot.slane %v3446_v44, 1 }
 0x194   : > { %2383 = vmatprep.subr.mxu0 %v1169_v12  ;;  %2670 = vmatpush3.msra.mxu1 %v742_v11  ;;  %v1147_v35 = vld [vmem:[#allocation9 + $0x198] sm:$0xff]  ;;  %v735_v36 = vld [vmem:[#allocation9 + $0x110] sm:$0xff]  ;;  %v668_v43 = vrot.slane %v3438_v33, 1  ;;  %v734_v46 = vld [vmem:[#allocation9 + $0x108] sm:$0xff]  ;;  %v1080_v54 = vrot.slane %v1042_v45, 7  ;;  %v1120_v61 = vrot.slane %v1042_v45, 1 }
 0x195   : > { %2384 = vmatpush3.msra.mxu0 %v1153_v13  ;;  %2671 = vmatprep.subr.mxu1 %v741_v14  ;;  %v1162_v38 = vld [vmem:[#allocation9 + $0x210] sm:$0xff]  ;;  %v3442_v40 = vld [vmem:[#allocation2 + $0x50] sm:$0xff]  ;;  %v1161_v47 = vld [vmem:[#allocation9 + $0x208] sm:$0xff] }
 0x196   : > { %2385 = vmatprep.subr.mxu0 %v1168_v15  ;;  %2672 = vmatpush3.msra.mxu1 %v741_v14  ;;  %v1146_v41 = vld [vmem:[#allocation9 + $0x190] sm:$0xff]  ;;  %v1145_v49 = vld [vmem:[#allocation9 + $0x188] sm:$0xff]  ;;  %v676_v50 = vrot.slane %v3442_v40, 1  ;;  %v733_v51 = vld [vmem:[#allocation9 + $0x100] sm:$0xff]  ;;  %v693_v55 = vsel %vm684_vm0, %v660_v42, %v668_v43  ;;  %v3466_v62 = vsel %vm643_vm1, %v1080_v54, %v1064_v53 }
 0x197   : > { %2386 = vmatpush3.msra.mxu0 %v1152_v16  ;;  %2673 = vmatprep.subr.mxu1 %v740_v17  ;;  %v3449_v48 = vld [vmem:[#allocation2 + $0x20] sm:$0xff]  ;;  %v1160_v52 = vld [vmem:[#allocation9 + $0x200] sm:$0xff]  ;;  %v732_v60 = vld [vmem:[#allocation9 + $0xf8] sm:$0xff] }
 0x198   : > { %2387 = vmatprep.subr.mxu0 %v1167_v18  ;;  %2674 = vmatpush3.msra.mxu1 %v740_v17  ;;  %v669_v57 = vrot.slane %v3449_v48, 1  ;;  %v1144_v37 = vld [vmem:[#allocation9 + $0x180] sm:$0xff]  ;;  %v685_v59 = vsel %vm684_vm0, %v668_v43, %v676_v50  ;;  %v716_v63 = vld [vmem:[#allocation9 + $0x78] sm:$0xff]  ;;  %v1072_v0 = vrot.slane %v3449_v48, 7  ;;  %v731_v2 = vld [vmem:[#allocation9 + $0xf0] sm:$0xff] }
 0x199   : > { %2388 = vmatpush3.msra.mxu0 %v1151_v19  ;;  %2675 = vmatprep.subr.mxu1 %v739_v20  ;;  %v3458_v39 = vld [vmem:[#allocation2 + $0x78] sm:$0xff]  ;;  %v715_v6 = vld [vmem:[#allocation9 + $0x70] sm:$0xff]  ;;  %v3491_v16 = vld [vmem:[#allocation2 + $0x10] sm:$0xff] }
 0x19a   : > { %2389 = vmatprep.subr.mxu0 %v1166_v21  ;;  %2676 = vmatpush3.msra.mxu1 %v739_v20  ;;  %v3460_v58 = vld [vmem:[#allocation2 + $0x98] sm:$0xff]  ;;  %v3472_v3 = vsel %vm684_vm0, %v1104_v56, %v669_v57  ;;  %v662_v4 = vrot.slane %v3458_v39, 1  ;;  %v3476_v7 = vld [vmem:[#allocation2 + $0x48] sm:$0xff]  ;;  %v3483_v9 = vsel %vm684_vm0, %v669_v57, %v1120_v61  ;;  %v3488_v12 = vsel %vm643_vm1, %v1064_v53, %v1072_v0  ;;  %v3544_v53 = vld [vmem:[#allocation2 + $0xa0] sm:$0xff] }
 0x19b   : > { %2390 = vmatpush3.msra.mxu0 %v1150_v22  ;;  %2677 = vmatprep.subr.mxu1 %v738_v23  ;;  %v601_v1 = vld [vmem:[#allocation2 + $0xd8] sm:$0xff]  ;;  %v670_v5 = vrot.slane %v3460_v58, 1  ;;  %v3478_v8 = vld [vmem:[#allocation2 + $0x68] sm:$0xff]  ;;  %v1065_v14 = vrot.slane %v3458_v39, 7  ;;  %v663_v19 = vrot.slane %v3476_v7, 1  ;;  %v3501_v22 = vld [vmem:[#allocation2 + $0xc0] sm:$0xff] }
 0x19c   : > { %2391 = vmatprep.subr.mxu0 %v1165_v24  ;;  %2678 = vmatpush3.msra.mxu1 %v738_v23  ;;  %v730_v10 = vld [vmem:[#allocation9 + $0xe8] sm:$0xff]  ;;  %v678_v11 = vrot.slane %v601_v1, 1  ;;  %v1081_v15 = vrot.slane %v601_v1, 7  ;;  %v729_v17 = vld [vmem:[#allocation9 + $0xe0] sm:$0xff]  ;;  %v671_v20 = vrot.slane %v3478_v8, 1  ;;  %v3503_v23 = vld [vmem:[#allocation2 + $0xc8] sm:$0xff] }
 0x19d   : > { %2392 = vmatpush3.msra.mxu0 %v1149_v26  ;;  %2679 = vmatprep.subr.mxu1 %v737_v27  ;;  %v714_v13 = vld [vmem:[#allocation9 + $0x68] sm:$0xff]  ;;  %v3496_v18 = vsel %vm684_vm0, %v662_v4, %v670_v5  ;;  %v713_v21 = vld [vmem:[#allocation9 + $0x60] sm:$0xff]  ;;  %v728_v25 = vld [vmem:[#allocation9 + $0xd8] sm:$0xff]  ;;  %v679_v26 = vrot.slane %v3491_v16, 1 }
 0x19e   : > { %2393 = vmatprep.subr.mxu0 %v1164_v28  ;;  %2680 = vmatpush3.msra.mxu1 %v737_v27  ;;  %v3508_v24 = vsel %vm684_vm0, %v670_v5, %v678_v11  ;;  %v3514_v27 = vsel %vm643_vm1, %v1081_v15, %v1065_v14  ;;  %v712_v28 = vld [vmem:[#allocation9 + $0x58] sm:$0xff]  ;;  %v3529_v43 = vld [vmem:[#allocation2 + $0x58] sm:$0xff]  ;;  %v3575_v11 = vld [vmem:[#allocation2 + $0xe0] sm:$0xff] }
 0x19f   : > { %2394 = vmatpush3.msra.mxu0 %v1148_v29  ;;  %2681 = vmatprep.subr.mxu1 %v736_v30  ;;  %v1073_v29 = vrot.slane %v3460_v58, 7  ;;  %v3527_v42 = vld [vmem:[#allocation2 + $0xe8] sm:$0xff]  ;;  %v3534_v45 = vsel %vm684_vm0, %v671_v20, %v679_v26  ;;  %v710_v50 = vld [vmem:[#allocation9 + $0x48] sm:$0xff]  ;;  %v725_v54 = vld [vmem:[#allocation9 + $0xc0] sm:$0xff]  ;;  %v673_v57 = vrot.slane %v3529_v43, 1 }
 0x1a0   : > { %2395 = vmatprep.subr.mxu0 %v1163_v31  ;;  %2682 = vmatpush3.msra.mxu1 %v736_v30  ;;  %v3517_v30 = vld [vmem:[#allocation2 + $0x80] sm:$0xff]  ;;  %v665_v56 = vrot.slane %v3527_v42, 1  ;;  %v3558_v61 = vld [vmem:[#allocation2 + $0x28] sm:$0xff]  ;;  %v3567_v4 = vld [vmem:[#allocation2 + $0xb0] sm:$0xff] }
 0x1a1   : > { %2396 = vmatpush3.msra.mxu0 %v1147_v35  ;;  %2683 = vmatprep.subr.mxu1 %v735_v36  ;;  %v727_v31 = vld [vmem:[#allocation9 + $0xd0] sm:$0xff]  ;;  %v3522_v35 = vsel %vm684_vm0, %v663_v19, %v671_v20  ;;  %v724_v1 = vld [vmem:[#allocation9 + $0xb8] sm:$0xff] }
 0x1a2   : > { %2397 = vmatprep.subr.mxu0 %v1162_v38  ;;  %2684 = vmatpush3.msra.mxu1 %v735_v36  ;;  %v664_v36 = vrot.slane %v3501_v22, 1  ;;  %v672_v38 = vrot.slane %v3503_v23, 1  ;;  %v3581_v15 = vsel %vm684_vm0, %v665_v56, %v673_v57  ;;  %v707_v19 = vld [vmem:[#allocation9 + $0x30] sm:$0xff]  ;;  %v720_v56 = vld [vmem:[#allocation9 + $0x98] sm:$0xff] }
 0x1a3   : > { %2398 = vmatpush3.msra.mxu0 %v1146_v41  ;;  %2685 = vmatprep.subr.mxu1 %v734_v46  ;;  %v711_v41 = vld [vmem:[#allocation9 + $0x50] sm:$0xff] }
 0x1a4   : > { %2399 = vmatprep.subr.mxu0 %v1161_v47  ;;  %2686 = vmatpush3.msra.mxu1 %v734_v46  ;;  %v726_v46 = vld [vmem:[#allocation9 + $0xc8] sm:$0xff]  ;;  %v680_v47 = vrot.slane %v3517_v30, 1  ;;  %v3586_v20 = vld [vmem:[#allocation2 + $0xa8] sm:$0xff] }
 0x1a5   : > { %2400 = vmatpush3.msra.mxu0 %v1145_v49  ;;  %2687 = vmatprep.subr.mxu1 %v733_v51  ;;  %v3540_v49 = vsel %vm643_vm1, %v1065_v14, %v1073_v29  ;;  %v723_v14 = vld [vmem:[#allocation9 + $0xb0] sm:$0xff]  ;;  %v682_v29 = vrot.slane %v3575_v11, 1 }
 0x1a6   : > { %2401 = vmatprep.subr.mxu0 %v1160_v52  ;;  %2688 = vmatpush3.msra.mxu1 %v733_v51  ;;  %v1066_v51 = vrot.slane %v3476_v7, 7  ;;  %v1082_v52 = vrot.slane %v3491_v16, 7  ;;  %v3564_v0 = vsel %vm684_vm0, %v672_v38, %v680_v47  ;;  %v721_v47 = vld [vmem:[#allocation9 + $0xa0] sm:$0xff] }
 0x1a7   : > { %2689 = vmatprep.mubr.f32.mxu1 %v693_v55  ;;  %2402 = vmatpush3.msra.mxu0 %v1144_v37  ;;  %v3549_v55 = vsel %vm684_vm0, %v664_v36, %v672_v38  ;;  %v3553_v37 = vld [vmem:[#allocation2 + $0xd0] sm:$0xff]  ;;  %v706_v36 = vld [vmem:[#allocation9 + $0x28] sm:$0xff]  ;;  %v1067_v38 = vrot.slane %v3501_v22, 7 }
 0x1a8   : > { %1240 = vmatprep.mubr.f32.mxu0 %v3446_v44  ;;  %2690 = vmatmul.mubr.f32.vlgmr.msra.gmra.mxu1 %v685_v59  ;;  %v709_v59 = vld [vmem:[#allocation9 + $0x40] sm:$0xff]  ;;  %v3572_v5 = vsel %vm643_vm1, %v1082_v52, %v1066_v51  ;;  %v667_v52 = vrot.slane %v3586_v20, 1 }
 0x1a9   : > { %2291 = vmatprep.subr.mxu1 %v732_v60  ;;  %1241 = vmatmul.mubr.f32.vlgmr.msra.gmra.mxu0 %v3466_v62  ;;  %v3556_v60 = vld [vmem:[#allocation2 + $0x90] sm:$0xff] }
 0x1aa   : > { %2292 = vmatpush3.msra.mxu1 %v716_v63  ;;  %2692 = vmatprep.mubr.f32.mxu1 %v3472_v3  ;;  %v1127_v63 = vrot.slane %v3553_v37, 1  ;;  %v666_v16 = vrot.slane %v3556_v60, 1 }
 0x1ab   : > { %2293 = vmatprep.subr.mxu1 %v731_v2  ;;  %1245 = vmatprep.mubr.f32.mxu0 %v3449_v48  ;;  %v681_v2 = vrot.slane %v3544_v53, 1 }
 0x1ac   : > { %2294 = vmatpush3.msra.mxu1 %v715_v6  ;;  %v708_v6 = vld [vmem:[#allocation9 + $0x38] sm:$0xff] }
 0x1ad   : > { %2693 = vmatmul.mubr.f32.gmra.mxu1 %v3483_v9  ;;  %2295 = vmatprep.subr.mxu1 %v730_v10  ;;  %v1074_v10 = vrot.slane %v3478_v8, 7  ;;  %v3599_v26 = vsel %vm684_vm0, %v673_v57, %v681_v2  ;;  %v719_v2 = vld [vmem:[#allocation9 + $0x90] sm:$0xff] }
 0x1ae   : > { %1246 = vmatmul.mubr.f32.gmra.mxu0 %v3488_v12  ;;  %2296 = vmatpush3.msra.mxu1 %v714_v13  ;;  %v1119_v13 = vrot.slane %v3567_v4, 1 }
 0x1af   : > { %2297 = vmatprep.subr.mxu1 %v729_v17  ;;  %2695 = vmatprep.mubr.f32.mxu1 %v3496_v18  ;;  %v674_v17 = vrot.slane %v3558_v61, 1 }
 0x1b0   : > { %2298 = vmatpush3.msra.mxu1 %v713_v21  ;;  %1250 = vmatprep.mubr.f32.mxu0 %v3458_v39  ;;  %v3588_v21 = vld [vmem:[#allocation2 + $0x60] sm:$0xff] }
 0x1b1   : > { %2696 = vmatmul.mubr.f32.gmra.mxu1 %v3508_v24  ;;  %2299 = vmatprep.subr.mxu1 %v728_v25  ;;  %v3594_v25 = vsel %vm684_vm0, %v1119_v13, %v1127_v63  ;;  %v704_v63 = vld [vmem:[#allocation9 + $0x18] sm:$0xff] }
 0x1b2   : > { %1251 = vmatmul.mubr.f32.gmra.mxu0 %v3514_v27  ;;  %2300 = vmatpush3.msra.mxu1 %v712_v28  ;;  %v722_v28 = vld [vmem:[#allocation9 + $0xa8] sm:$0xff] }
 0x1b3   : > { %2301 = vmatprep.subr.mxu1 %v727_v31  ;;  %2698 = vmatprep.mubr.f32.mxu1 %v3522_v35  ;;  %v3605_v31 = vsel %vm643_vm1, %v1066_v51, %v1074_v10  ;;  %v675_v51 = vrot.slane %v3588_v21, 1  ;;  %v703_v10 = vld [vmem:[#allocation9 + $0x10] sm:$0xff] }
 0x1b4   : > { %2302 = vmatpush3.msra.mxu1 %v711_v41  ;;  %1255 = vmatprep.mubr.f32.mxu0 %v3460_v58  ;;  %v1083_v41 = vrot.slane %v3517_v30, 7  ;;  %v3622_v30 = vsel %vm684_vm0, %v674_v17, %v682_v29  ;;  %v1650_v29 = vld [vmem:[#allocation9 + $0x3f8] sm:$0xff] }
 0x1b5   : > { %2699 = vmatmul.mubr.f32.gmra.mxu1 %v3534_v45  ;;  %2303 = vmatprep.subr.mxu1 %v726_v46  ;;  %v3609_v46 = vld [vmem:[#allocation2 + $0x88] sm:$0xff] }
 0x1b6   : > { %1256 = vmatmul.mubr.f32.gmra.mxu0 %v3540_v49  ;;  %2304 = vmatpush3.msra.mxu1 %v710_v50  ;;  %v3614_v50 = vsel %vm684_vm0, %v666_v16, %v674_v17  ;;  %v683_v57 = vrot.slane %v3609_v46, 1  ;;  %v718_v17 = vld [vmem:[#allocation9 + $0x88] sm:$0xff] }
 0x1b7   : > { %2305 = vmatprep.subr.mxu1 %v725_v54  ;;  %2701 = vmatprep.mubr.f32.mxu1 %v3549_v55  ;;  %v705_v54 = vld [vmem:[#allocation9 + $0x20] sm:$0xff] }
 0x1b8   : > { %2306 = vmatpush3.msra.mxu1 %v709_v59  ;;  %1260 = vmatprep.mubr.f32.mxu0 %v3476_v7  ;;  %v3628_v59 = vsel %vm643_vm1, %v1083_v41, %v1067_v38  ;;  %v3641_v16 = vsel %vm684_vm0, %v675_v51, %v683_v57  ;;  %v1084_v41 = vrot.slane %v3544_v53, 7  ;;  %v1352_v57 = vld [vmem:[#allocation9 + $0x2f8] sm:$0xff] }
 0x1b9   : > { %2702 = vmatmul.mubr.f32.gmra.mxu1 %v3564_v0  ;;  %2307 = vmatprep.subr.mxu1 %v724_v1  ;;  %v1075_v1 = vrot.slane %v3503_v23, 7 }
 0x1ba   : > { %1261 = vmatmul.mubr.f32.gmra.mxu0 %v3572_v5  ;;  %2308 = vmatpush3.msra.mxu1 %v708_v6  ;;  %v3634_v6 = vsel %vm684_vm0, %v667_v52, %v675_v51  ;;  %v1634_v52 = vld [vmem:[#allocation9 + $0x378] sm:$0xff]  ;;  %v701_v51 = vld [vmem:[#allocation9] sm:$0xff] }
 0x1bb   : > { %2309 = vmatprep.subr.mxu1 %v723_v14  ;;  %2704 = vmatprep.mubr.f32.mxu1 %v3581_v15  ;;  %v617_v14 = vrot.slane %v3436_v32, 7 }
 0x1bc   : > { %2310 = vmatpush3.msra.mxu1 %v707_v19  ;;  %1265 = vmatprep.mubr.f32.mxu0 %v3478_v8  ;;  %v633_v19 = vrot.slane %v3442_v40, 7  ;;  %v717_v40 = vld [vmem:[#allocation9 + $0x80] sm:$0xff] }
 0x1bd   : > { %2705 = vmatmul.mubr.f32.gmra.mxu1 %v3599_v26  ;;  %2311 = vmatprep.subr.mxu1 %v722_v28  ;;  %v3647_v28 = vsel %vm643_vm1, %v1067_v38, %v1075_v1  ;;  %v1633_v1 = vld [vmem:[#allocation9 + $0x370] sm:$0xff] }
 0x1be   : > { %1266 = vmatmul.mubr.f32.gmra.mxu0 %v3605_v31  ;;  %2312 = vmatpush3.msra.mxu1 %v706_v36  ;;  %v1068_v36 = vrot.slane %v3527_v42, 7  ;;  %v652_v38 = vsel %vm643_vm1, %v633_v19, %v617_v14  ;;  %v1069_v19 = vrot.slane %v3556_v60, 7 }
 0x1bf   : > { %2313 = vmatprep.subr.mxu1 %v721_v47  ;;  %2707 = vmatprep.mubr.f32.mxu1 %v3614_v50  ;;  %v702_v47 = vld [vmem:[#allocation9 + $0x8] sm:$0xff] }
 0x1c0   : > { %2314 = vmatpush3.msra.mxu1 %v705_v54  ;;  %1270 = vmatprep.mubr.f32.mxu0 %v3501_v22  ;;  %v3658_v53 = vsel %vm643_vm1, %v1084_v41, %v1068_v36  ;;  %v1076_v54 = vrot.slane %v3529_v43, 7  ;;  %v1632_v41 = vld [vmem:[#allocation9 + $0x368] sm:$0xff] }
 0x1c1   : > { %2708 = vmatmul.mubr.f32.gmra.mxu1 %v3622_v30  ;;  %2315 = vmatprep.subr.mxu1 %v720_v56  ;;  %v625_v56 = vrot.slane %v3438_v33, 7 }
 0x1c2   : > { %1271 = vmatmul.mubr.f32.gmra.mxu0 %v3628_v59  ;;  %2316 = vmatpush3.msra.mxu1 %v704_v63  ;;  %v1649_v63 = vld [vmem:[#allocation9 + $0x3f0] sm:$0xff] }
 0x1c3   : > { %2317 = vmatprep.subr.mxu1 %v719_v2  ;;  %2710 = vmatprep.mubr.f32.mxu1 %v3634_v6  ;;  %v644_v2 = vsel %vm643_vm1, %v617_v14, %v625_v56  ;;  %v1647_v14 = vld [vmem:[#allocation9 + $0x3e0] sm:$0xff]  ;;  %v1644_v56 = vld [vmem:[#allocation9 + $0x3c8] sm:$0xff] }
 0x1c4   : > { %2318 = vmatpush3.msra.mxu1 %v703_v10  ;;  %1275 = vmatprep.mubr.f32.mxu0 %v3503_v23  ;;  %v3669_v10 = vsel %vm643_vm1, %v1068_v36, %v1076_v54  ;;  %v1631_v36 = vld [vmem:[#allocation9 + $0x360] sm:$0xff] }
 0x1c5   : > { %2711 = vmatmul.mubr.f32.gmra.mxu1 %v3641_v16  ;;  %2319 = vmatprep.subr.mxu1 %v718_v17  ;;  %v1648_v17 = vld [vmem:[#allocation9 + $0x3e8] sm:$0xff]  ;;  %v1349_v54 = vld [vmem:[#allocation9 + $0x2e0] sm:$0xff] }
 0x1c6   : > { %1276 = vmatmul.mubr.f32.gmra.mxu0 %v3647_v28  ;;  %2483 = vmatprep.subr.mxu0 %v1650_v29  ;;  %v1085_v29 = vrot.slane %v3575_v11, 7  ;;  %v1646_v11 = vld [vmem:[#allocation9 + $0x3d8] sm:$0xff] }
 0x1c7   : > { %2320 = vmatpush3.msra.mxu1 %v702_v47  ;;  %2484 = vmatpush3.msra.mxu0 %v1634_v52  ;;  %v1077_v52 = vrot.slane %v3558_v61, 7 }
 0x1c8   : > { %2321 = vmatprep.subr.mxu1 %v717_v40  ;;  %958 = vmatprep.mubr.f32.mxu1 %v3436_v32  ;;  %v1351_v32 = vld [vmem:[#allocation9 + $0x2f0] sm:$0xff]  ;;  %v3678_v47 = vsel %vm643_vm1, %v1085_v29, %v1069_v19  ;;  %v1630_v40 = vld [vmem:[#allocation9 + $0x358] sm:$0xff] }
 0x1c9   : > { %2322 = vmatpush3.msra.mxu1 %v701_v51  ;;  %1280 = vmatprep.mubr.f32.mxu0 %v3527_v42  ;;  %v1645_v51 = vld [vmem:[#allocation9 + $0x3d0] sm:$0xff] }
 0x1ca   : > { %959 = vmatmul.mubr.f32.vlgmr.msra.gmra.mxu1 %v652_v38  ;;  %1281 = vmatmul.mubr.f32.gmra.mxu0 %v3658_v53  ;;  %v1629_v38 = vld [vmem:[#allocation9 + $0x350] sm:$0xff] }
 0x1cb   : > { %2713 = vmatprep.subr.mxu1 %v1352_v57  ;;  %2485 = vmatprep.subr.mxu0 %v1649_v63  ;;  %v1628_v63 = vld [vmem:[#allocation9 + $0x348] sm:$0xff]  ;;  %v3704_v29 = vld [vmem:[#allocation2 + $0x8] sm:$0xff] }
 0x1cc   : > { %2714 = vmatpush3.msra.mxu1 %v1352_v57  ;;  %2486 = vmatpush3.msra.mxu0 %v1633_v1  ;;  %v1070_v57 = vrot.slane %v3586_v20, 7  ;;  %v1643_v1 = vld [vmem:[#allocation9 + $0x3c0] sm:$0xff] }
 0x1cd   : > { %963 = vmatprep.mubr.f32.mxu1 %v3438_v33  ;;  %1285 = vmatprep.mubr.f32.mxu0 %v3529_v43  ;;  %v1350_v33 = vld [vmem:[#allocation9 + $0x2e8] sm:$0xff] }
 0x1ce   : > { %964 = vmatmul.mubr.f32.gmra.mxu1 %v644_v2  ;;  %1286 = vmatmul.mubr.f32.gmra.mxu0 %v3669_v10  ;;  %v1627_v2 = vld [vmem:[#allocation9 + $0x340] sm:$0xff] }
 0x1cf   : > { %2715 = vmatprep.subr.mxu1 %v1351_v32  ;;  %2487 = vmatprep.subr.mxu0 %v1648_v17  ;;  %v1078_v17 = vrot.slane %v3588_v21, 7 }
 0x1d0   : > { %2716 = vmatpush3.msra.mxu1 %v1351_v32  ;;  %2488 = vmatpush3.msra.mxu0 %v1632_v41  ;;  %v1642_v32 = vld [vmem:[#allocation9 + $0x3b8] sm:$0xff]  ;;  %v1625_v41 = vld [vmem:[#allocation9 + $0x330] sm:$0xff] }
 0x1d1   : > { %2489 = vmatprep.subr.mxu0 %v1647_v14  ;;  %968 = vmatprep.mubr.f32.mxu1 %v3446_v44  ;;  %v3687_v44 = vsel %vm643_vm1, %v1069_v19, %v1077_v52  ;;  %v1641_v19 = vld [vmem:[#allocation9 + $0x3b0] sm:$0xff]  ;;  %v3708_v14 = vsel %vm643_vm1, %v1070_v57, %v1078_v17  ;;  %v1087_v52 = vrot.slane %v3553_v37, 7  ;;  %v1346_v37 = vld [vmem:[#allocation9 + $0x2c8] sm:$0xff] }
 0x1d2   : > { %1290 = vmatprep.mubr.f32.mxu0 %v3556_v60  ;;  %2490 = vmatpush3.msra.mxu0 %v1631_v36  ;;  %v1347_v36 = vld [vmem:[#allocation9 + $0x2d0] sm:$0xff]  ;;  %v1620_v17 = vld [vmem:[#allocation9 + $0x308] sm:$0xff] }
 0x1d3   : > { %969 = vmatmul.mubr.f32.gmra.mxu1 %v3466_v62  ;;  %1291 = vmatmul.mubr.f32.gmra.mxu0 %v3678_v47  ;;  %v1086_v62 = vrot.slane %v3609_v46, 7  ;;  %v1348_v46 = vld [vmem:[#allocation9 + $0x2d8] sm:$0xff] }
 0x1d4   : > { %2717 = vmatprep.subr.mxu1 %v1350_v33  ;;  %2491 = vmatprep.subr.mxu0 %v1646_v11  ;;  %v1071_v11 = vrot.slane %v3704_v29, 7 }
 0x1d5   : > { %2718 = vmatpush3.msra.mxu1 %v1350_v33  ;;  %2492 = vmatpush3.msra.mxu0 %v1630_v40  ;;  %v1640_v33 = vld [vmem:[#allocation9 + $0x3a8] sm:$0xff] }
 0x1d6   : > { %2493 = vmatprep.subr.mxu0 %v1645_v51  ;;  %973 = vmatprep.mubr.f32.mxu1 %v3449_v48  ;;  %v3697_v48 = vsel %vm643_vm1, %v1086_v62, %v1070_v57  ;;  %v1624_v40 = vld [vmem:[#allocation9 + $0x328] sm:$0xff]  ;;  %v1639_v51 = vld [vmem:[#allocation9 + $0x3a0] sm:$0xff]  ;;  %v1079_v57 = vrot.slane %v3567_v4, 7  ;;  %v1622_v62 = vld [vmem:[#allocation9 + $0x318] sm:$0xff] }
 0x1d7   : > { %1295 = vmatprep.mubr.f32.mxu0 %v3558_v61  ;;  %2494 = vmatpush3.msra.mxu0 %v1629_v38  ;;  %v1623_v38 = vld [vmem:[#allocation9 + $0x320] sm:$0xff] }
 0x1d8   : > { %974 = vmatmul.mubr.f32.gmra.mxu1 %v3488_v12  ;;  %1296 = vmatmul.mubr.f32.gmra.mxu0 %v3687_v44  ;;  %v1626_v12 = vld [vmem:[#allocation9 + $0x338] sm:$0xff] }
 0x1d9   : > { %2719 = vmatprep.subr.mxu1 %v1349_v54  ;;  %2495 = vmatprep.subr.mxu0 %v1644_v56  ;;  %v1638_v56 = vld [vmem:[#allocation9 + $0x398] sm:$0xff] }
 0x1da   : > { %2720 = vmatpush3.msra.mxu1 %v1349_v54  ;;  %2496 = vmatpush3.msra.mxu0 %v1628_v63  ;;  %v3718_v54 = vsel %vm643_vm1, %v1087_v52, %v1071_v11  ;;  %v1637_v63 = vld [vmem:[#allocation9 + $0x390] sm:$0xff]  ;;  %v1813_v52 = vld [vmem:[#allocation9 + $0x408] sm:$0xff] }
 0x1db   : > { %2497 = vmatprep.subr.mxu0 %v1643_v1  ;;  %978 = vmatprep.mubr.f32.mxu1 %v3458_v39  ;;  %v1621_v1 = vld [vmem:[#allocation9 + $0x310] sm:$0xff] }
 0x1dc   : > { %1300 = vmatprep.mubr.f32.mxu0 %v3586_v20  ;;  %2498 = vmatpush3.msra.mxu0 %v1627_v2  ;;  %v3727_v2 = vsel %vm643_vm1, %v1071_v11, %v1079_v57 }
 0x1dd   : > { %979 = vmatmul.mubr.f32.gmra.mxu1 %v3514_v27  ;;  %1301 = vmatmul.mubr.f32.gmra.mxu0 %v3697_v48 }
 0x1de   : > { %2721 = vmatprep.subr.mxu1 %v1348_v46  ;;  %2499 = vmatprep.subr.mxu0 %v1642_v32  ;;  %v1636_v32 = vld [vmem:[#allocation9 + $0x388] sm:$0xff] }
 0x1df   : > { %2722 = vmatpush3.msra.mxu1 %v1348_v46  ;;  %2500 = vmatpush3.msra.mxu0 %v1626_v12  ;;  %v1345_v46 = vld [vmem:[#allocation9 + $0x2c0] sm:$0xff] }
 0x1e0   : > { %2501 = vmatprep.subr.mxu0 %v1641_v19  ;;  %983 = vmatprep.mubr.f32.mxu1 %v3460_v58  ;;  %v1635_v12 = vld [vmem:[#allocation9 + $0x380] sm:$0xff] }
 0x1e1   : > { %1305 = vmatprep.mubr.f32.mxu0 %v3588_v21  ;;  %2502 = vmatpush3.msra.mxu0 %v1625_v41  ;;  %v1619_v19 = vld [vmem:[#allocation9 + $0x300] sm:$0xff]  ;;  %v1344_v41 = vld [vmem:[#allocation9 + $0x2b8] sm:$0xff] }
 0x1e2   : > { %984 = vmatmul.mubr.f32.gmra.mxu1 %v3540_v49  ;;  %1306 = vmatmul.mubr.f32.gmra.mxu0 %v3708_v14 }
 0x1e3   : > { %2723 = vmatprep.subr.mxu1 %v1347_v36  ;;  %2503 = vmatprep.subr.mxu0 %v1640_v33  ;;  %v1342_v33 = vld [vmem:[#allocation9 + $0x2a8] sm:$0xff] }
 0x1e4   : > { %2724 = vmatpush3.msra.mxu1 %v1347_v36  ;;  %2504 = vmatpush3.msra.mxu0 %v1624_v40  ;;  %v1343_v36 = vld [vmem:[#allocation9 + $0x2b0] sm:$0xff] }
 0x1e5   : > { %2505 = vmatprep.subr.mxu0 %v1639_v51  ;;  %988 = vmatprep.mubr.f32.mxu1 %v3476_v7  ;;  %v1812_v51 = vld [vmem:[#allocation9 + $0x400] sm:$0xff] }
 0x1e6   : > { %1310 = vmatprep.mubr.f32.mxu0 %v3704_v29  ;;  %2506 = vmatpush3.msra.mxu0 %v1623_v38 }
 0x1e7   : > { %989 = vmatmul.mubr.f32.gmra.mxu1 %v3572_v5  ;;  %1311 = vmatmul.mubr.f32.gmra.mxu0 %v3718_v54 }
 0x1e8   : > { %2725 = vmatprep.subr.mxu1 %v1346_v37  ;;  %2507 = vmatprep.subr.mxu0 %v1638_v56 }
 0x1e9   : > { %2726 = vmatpush3.msra.mxu1 %v1346_v37  ;;  %2508 = vmatpush3.msra.mxu0 %v1622_v62 }
 0x1ea   : > { %2509 = vmatprep.subr.mxu0 %v1637_v63  ;;  %993 = vmatprep.mubr.f32.mxu1 %v3478_v8 }
 0x1eb   : > { %1315 = vmatprep.mubr.f32.mxu0 %v3567_v4  ;;  %2510 = vmatpush3.msra.mxu0 %v1621_v1 }
 0x1ec   : > { %994 = vmatmul.mubr.f32.gmra.mxu1 %v3605_v31  ;;  %1316 = vmatmul.mubr.f32.gmra.mxu0 %v3727_v2 }
 0x1ed   : > { %2727 = vmatprep.subr.mxu1 %v1345_v46  ;;  %2511 = vmatprep.subr.mxu0 %v1636_v32 }
 0x1ee   : > { %2728 = vmatpush3.msra.mxu1 %v1345_v46  ;;  %2512 = vmatpush3.msra.mxu0 %v1620_v17 }
 0x1ef   : > { %2513 = vmatprep.subr.mxu0 %v1635_v12  ;;  %998 = vmatprep.mubr.f32.mxu1 %v3501_v22 }
 0x1f0   : > { %2514 = vmatpush3.msra.mxu0 %v1619_v19  ;;  %1715 = vmatprep.mubr.f32.mxu0 %v3458_v39  ;;  %v1341_v39 = vld [vmem:[#allocation9 + $0x2a0] sm:$0xff] }
 0x1f1   : > { %999 = vmatmul.mubr.f32.gmra.mxu1 %v3628_v59  ;;  %2729 = vmatprep.subr.mxu1 %v1344_v41 }
 0x1f2   : > { %1716 = vmatmul.mubr.f32.vlgmr.msra.gmra.mxu0 %v3514_v27  ;;  %2730 = vmatpush3.msra.mxu1 %v1344_v41  ;;  %v1826_v27 = vld [vmem:[#allocation9 + $0x470] sm:$0xff] }
 0x1f3   : > { %1003 = vmatprep.mubr.f32.mxu1 %v3503_v23  ;;  %1720 = vmatprep.mubr.f32.mxu0 %v3460_v58  ;;  %v1340_v58 = vld [vmem:[#allocation9 + $0x298] sm:$0xff] }
 0x1f4   : > { %2731 = vmatprep.subr.mxu1 %v1343_v36 }
 0x1f5   : > { %1004 = vmatmul.mubr.f32.gmra.mxu1 %v3647_v28 }
 0x1f6   : > { %1721 = vmatmul.mubr.f32.gmra.mxu0 %v3540_v49  ;;  %2732 = vmatpush3.msra.mxu1 %v1343_v36  ;;  %v1821_v49 = vld [vmem:[#allocation9 + $0x448] sm:$0xff] }
 0x1f7   : > { %1008 = vmatprep.mubr.f32.mxu1 %v3527_v42  ;;  %1725 = vmatprep.mubr.f32.mxu0 %v3476_v7  ;;  %v1339_v7 = vld [vmem:[#allocation9 + $0x290] sm:$0xff] }
 0x1f8   : > { %2733 = vmatprep.subr.mxu1 %v1342_v33 }
 0x1f9   : > { %1009 = vmatmul.mubr.f32.gmra.mxu1 %v3658_v53 }
 0x1fa   : > { %1726 = vmatmul.mubr.f32.gmra.mxu0 %v3572_v5  ;;  %2734 = vmatpush3.msra.mxu1 %v1342_v33  ;;  %v1818_v5 = vld [vmem:[#allocation9 + $0x430] sm:$0xff] }
 0x1fb   : > { %1013 = vmatprep.mubr.f32.mxu1 %v3529_v43  ;;  %1730 = vmatprep.mubr.f32.mxu0 %v3478_v8  ;;  %v1338_v8 = vld [vmem:[#allocation9 + $0x288] sm:$0xff] }
 0x1fc   : > { %2735 = vmatprep.subr.mxu1 %v1341_v39 }
 0x1fd   : > { %1014 = vmatmul.mubr.f32.gmra.mxu1 %v3669_v10 }
 0x1fe   : > { %1731 = vmatmul.mubr.f32.gmra.mxu0 %v3605_v31  ;;  %2736 = vmatpush3.msra.mxu1 %v1341_v39  ;;  %v3785_v31 = vld [vmem:[#allocation2 + $0x30] sm:$0xff] }
 0x1ff   : > { %1018 = vmatprep.mubr.f32.mxu1 %v3556_v60  ;;  %1735 = vmatprep.mubr.f32.mxu0 %v3501_v22  ;;  %v1337_v22 = vld [vmem:[#allocation9 + $0x280] sm:$0xff] }
 0x200   : > { %2737 = vmatprep.subr.mxu1 %v1340_v58 }
 0x201   : > { %1019 = vmatmul.mubr.f32.gmra.mxu1 %v3678_v47 }
 0x202   : > { %1736 = vmatmul.mubr.f32.gmra.mxu0 %v3628_v59  ;;  %2738 = vmatpush3.msra.mxu1 %v1340_v58 }
 0x203   : > { %1023 = vmatprep.mubr.f32.mxu1 %v3558_v61  ;;  %1740 = vmatprep.mubr.f32.mxu0 %v3503_v23  ;;  %v1827_v23 = vld [vmem:[#allocation9 + $0x478] sm:$0xff] }
 0x204   : > { %2739 = vmatprep.subr.mxu1 %v1339_v7 }
 0x205   : > { %1024 = vmatmul.mubr.f32.gmra.mxu1 %v3687_v44 }
 0x206   : > { %1741 = vmatmul.mubr.f32.gmra.mxu0 %v3647_v28  ;;  %2740 = vmatpush3.msra.mxu1 %v1339_v7  ;;  %v1562_v28 = vrot.slane %v3785_v31, 7 }
 0x207   : > { %1028 = vmatprep.mubr.f32.mxu1 %v3586_v20  ;;  %1745 = vmatprep.mubr.f32.mxu0 %v3527_v42  ;;  %v1825_v42 = vld [vmem:[#allocation9 + $0x468] sm:$0xff] }
 0x208   : > { %2741 = vmatprep.subr.mxu1 %v1338_v8 }
 0x209   : > { %1029 = vmatmul.mubr.f32.gmra.mxu1 %v3697_v48 }
 0x20a   : > { %1746 = vmatmul.mubr.f32.gmra.mxu0 %v3658_v53  ;;  %2742 = vmatpush3.msra.mxu1 %v1338_v8  ;;  %v1111_v53 = vrot.slane %v3704_v29, 1 }
 0x20b   : > { %1033 = vmatprep.mubr.f32.mxu1 %v3588_v21  ;;  %1750 = vmatprep.mubr.f32.mxu0 %v3529_v43  ;;  %v1824_v43 = vld [vmem:[#allocation9 + $0x460] sm:$0xff] }
 0x20c   : > { %2743 = vmatprep.subr.mxu1 %v1337_v22  ;;  %v1143_v11 = vsel %vm684_vm0, %v1111_v53, %v1119_v13 }
 0x20d   : > { %1034 = vmatmul.mubr.f32.gmra.mxu1 %v3708_v14 }
 0x20e   : > { %1751 = vmatmul.mubr.f32.gmra.mxu0 %v3669_v10  ;;  %2744 = vmatpush3.msra.mxu1 %v1337_v22  ;;  %v1816_v10 = vld [vmem:[#allocation9 + $0x420] sm:$0xff] }
 0x20f   : > { %2745 = vmatprep.mubr.f32.mxu1 %v3472_v3  ;;  %1755 = vmatprep.mubr.f32.mxu0 %v3556_v60  ;;  %v1823_v3 = vld [vmem:[#allocation9 + $0x458] sm:$0xff]  ;;  %v1820_v60 = vld [vmem:[#allocation9 + $0x440] sm:$0xff] }
 0x210   : > { %2769 = vmatprep.subr.mxu1 %v1827_v23 }
 0x211   : > { %2746 = vmatmul.mubr.f32.vlgmr.msra.gmra.mxu1 %v3483_v9  ;;  %v1822_v9 = vld [vmem:[#allocation9 + $0x450] sm:$0xff] }
 0x212   : > { %1756 = vmatmul.mubr.f32.gmra.mxu0 %v3678_v47  ;;  %2770 = vmatpush3.msra.mxu1 %v1827_v23  ;;  %v1537_v47 = vld [vmem:[#allocation2 + $0x18] sm:$0xff] }
 0x213   : > { %2771 = vmatprep.subr.mxu1 %v1826_v27  ;;  %2748 = vmatprep.mubr.f32.mxu1 %v3496_v18 }
 0x214   : > { %1760 = vmatprep.mubr.f32.mxu0 %v3558_v61  ;;  %2772 = vmatpush3.msra.mxu1 %v1826_v27  ;;  %v1819_v61 = vld [vmem:[#allocation9 + $0x438] sm:$0xff] }
 0x215   : > { %2749 = vmatmul.mubr.f32.gmra.mxu1 %v3508_v24  ;;  %2773 = vmatprep.subr.mxu1 %v1825_v42 }
 0x216   : > { %1761 = vmatmul.mubr.f32.gmra.mxu0 %v3687_v44  ;;  %2774 = vmatpush3.msra.mxu1 %v1825_v42  ;;  %v1815_v44 = vld [vmem:[#allocation9 + $0x418] sm:$0xff] }
 0x217   : > { %2775 = vmatprep.subr.mxu1 %v1824_v43  ;;  %2751 = vmatprep.mubr.f32.mxu1 %v3522_v35 }
 0x218   : > { %1765 = vmatprep.mubr.f32.mxu0 %v3586_v20  ;;  %2776 = vmatpush3.msra.mxu1 %v1824_v43  ;;  %v3783_v20 = vld [vmem:[#allocation2 + $0x70] sm:$0xff] }
 0x219   : > { %2752 = vmatmul.mubr.f32.gmra.mxu1 %v3534_v45  ;;  %2777 = vmatprep.subr.mxu1 %v1823_v3  ;;  %v1546_v59 = vrot.slane %v3783_v20, 7 }
 0x21a   : > { %1766 = vmatmul.mubr.f32.gmra.mxu0 %v3697_v48  ;;  %2778 = vmatpush3.msra.mxu1 %v1823_v3 }
 0x21b   : > { %2779 = vmatprep.subr.mxu1 %v1822_v9  ;;  %2754 = vmatprep.mubr.f32.mxu1 %v3549_v55  ;;  %v1578_v48 = vsel %vm643_vm1, %v1562_v28, %v1546_v59 }
 0x21c   : > { %1770 = vmatprep.mubr.f32.mxu0 %v3588_v21  ;;  %2780 = vmatpush3.msra.mxu1 %v1822_v9  ;;  %v1817_v21 = vld [vmem:[#allocation9 + $0x428] sm:$0xff] }
 0x21d   : > { %2755 = vmatmul.mubr.f32.gmra.mxu1 %v3564_v0  ;;  %2781 = vmatprep.subr.mxu1 %v1821_v49 }
 0x21e   : > { %1771 = vmatmul.mubr.f32.gmra.mxu0 %v3708_v14  ;;  %2782 = vmatpush3.msra.mxu1 %v1821_v49  ;;  %v1554_v14 = vrot.slane %v1537_v47, 7 }
 0x21f   : > { %2783 = vmatprep.subr.mxu1 %v1820_v60  ;;  %2757 = vmatprep.mubr.f32.mxu1 %v3581_v15 }
 0x220   : > { %1775 = vmatprep.mubr.f32.mxu0 %v3704_v29  ;;  %2784 = vmatpush3.msra.mxu1 %v1820_v60  ;;  %v1814_v29 = vld [vmem:[#allocation9 + $0x410] sm:$0xff]  ;;  %v1570_v40 = vsel %vm643_vm1, %v1546_v59, %v1554_v14 }
 0x221   : > { %2758 = vmatmul.mubr.f32.gmra.mxu1 %v3599_v26  ;;  %2785 = vmatprep.subr.mxu1 %v1819_v61 }
 0x222   : > { %1776 = vmatmul.mubr.f32.gmra.mxu0 %v3718_v54  ;;  %2786 = vmatpush3.msra.mxu1 %v1819_v61 }
 0x223   : > { %2787 = vmatprep.subr.mxu1 %v1818_v5  ;;  %2760 = vmatprep.mubr.f32.mxu1 %v3614_v50 }
 0x224   : > { %1780 = vmatprep.mubr.f32.mxu0 %v3567_v4  ;;  %2788 = vmatpush3.msra.mxu1 %v1818_v5 }
 0x225   : > { %2761 = vmatmul.mubr.f32.gmra.mxu1 %v3622_v30  ;;  %2789 = vmatprep.subr.mxu1 %v1817_v21 }
 0x226   : > { %1781 = vmatmul.mubr.f32.gmra.mxu0 %v3727_v2  ;;  %2790 = vmatpush3.msra.mxu1 %v1817_v21 }
 0x227   : > { %2791 = vmatprep.subr.mxu1 %v1816_v10  ;;  %2763 = vmatprep.mubr.f32.mxu1 %v3634_v6 }
 0x228   : > { %1785 = vmatprep.mubr.f32.mxu0 %v3783_v20  ;;  %2792 = vmatpush3.msra.mxu1 %v1816_v10 }
 0x229   : > { %2764 = vmatmul.mubr.f32.gmra.mxu1 %v3641_v16  ;;  %2793 = vmatprep.subr.mxu1 %v1815_v44 }
 0x22a   : > { %1786 = vmatmul.mubr.f32.gmra.mxu0 %v1578_v48  ;;  %2794 = vmatpush3.msra.mxu1 %v1815_v44 }
 0x22b   : > { %2795 = vmatprep.subr.mxu1 %v1814_v29  ;;  %2766 = vmatprep.mubr.f32.mxu1 %v1143_v11 }
 0x22c   : > { %1790 = vmatprep.mubr.f32.mxu0 %v1537_v47  ;;  %2796 = vmatpush3.msra.mxu1 %v1814_v29 }
 0x22d   : > { %2767 = vmatmul.mubr.f32.gmra.mxu1 %v3594_v25  ;;  %2797 = vmatprep.subr.mxu1 %v1813_v52 }
 0x22e   : > { %1791 = vmatmul.mubr.f32.gmra.mxu0 %v1570_v40  ;;  %2798 = vmatpush3.msra.mxu1 %v1813_v52 }
 0x22f   : > { %2799 = vmatprep.subr.mxu1 %v1812_v51  ;;  %2801 = vmatprep.mubr.f32.mxu1 %v3496_v18  ;;  %v1586_v18 = vrot.slane %v3783_v20, 1 }
 0x230   : > { %2800 = vmatpush3.msra.mxu1 %v1812_v51 }
 0x231   : > { %2802 = vmatmul.mubr.f32.vlgmr.msra.gmra.mxu1 %v3508_v24  ;;  %v1594_v24 = vrot.slane %v1537_v47, 1 }
 0x232   : > { %2804 = vmatprep.mubr.f32.mxu1 %v3522_v35  ;;  %v1602_v35 = vrot.slane %v3785_v31, 1 }
 0x235   : > { %2805 = vmatmul.mubr.f32.gmra.mxu1 %v3534_v45  ;;  %v1618_v45 = vsel %vm684_vm0, %v1586_v18, %v1594_v24 }
 0x236   : > { %2807 = vmatprep.mubr.f32.mxu1 %v3549_v55  ;;  %v1610_v55 = vsel %vm684_vm0, %v1594_v24, %v1602_v35 }
 0x239   : > { %2808 = vmatmul.mubr.f32.gmra.mxu1 %v3564_v0 }
 0x23a   : > { %2810 = vmatprep.mubr.f32.mxu1 %v3581_v15 }
 0x23d   : > { %2811 = vmatmul.mubr.f32.gmra.mxu1 %v3599_v26 }
 0x23e   : > { %2813 = vmatprep.mubr.f32.mxu1 %v3614_v50 }
 0x241   : > { %2814 = vmatmul.mubr.f32.gmra.mxu1 %v3622_v30 }
 0x242   : > { %2816 = vmatprep.mubr.f32.mxu1 %v3634_v6 }
 0x245   : > { %2817 = vmatmul.mubr.f32.gmra.mxu1 %v3641_v16 }
 0x246   : > { %2819 = vmatprep.mubr.f32.mxu1 %v1143_v11 }
 0x249   : > { %2820 = vmatmul.mubr.f32.gmra.mxu1 %v3594_v25 }
 0x24a   : > { %2822 = vmatprep.mubr.f32.mxu1 %v1618_v45 }
 0x24d   : > { %2823 = vmatmul.mubr.f32.gmra.mxu1 %v1610_v55 }
 0x268   : > { %v2691_v0 = vpop.f32.mrf.mxu1 }
 0x269   : > { %v2403_v4 = vpop.f32.mrf.mxu0 }
 0x26a   : > { %v815_v13 = vpop.f32.mrf.mxu1 }
 0x26b   : > { %v2404_v15 = vpop.f32.mrf.mxu0 }
 0x26c   : > { %v2405_v26 = vadd.f32 %v2404_v15, %v2403_v4 }
 0x26d   : > { %v3827_v50 = vpop.f32.mrf.mxu1 }
 0x26e   : > { %v2406_v30 = vpop.f32.mrf.mxu0 }
 0x26f   : > { %v825_v6 = vpop.f32.mrf.mxu1 }
 0x270   : > { %v2407_v16 = vpop.f32.mrf.mxu0 }
 0x271   : > { %v2408_v38 = vadd.f32 %v2407_v16, %v2406_v30  ;;  %v3829_v54 = vpop.f32.mrf.mxu1 }
 0x272   : > { %v2409_v37 = vpop.f32.mrf.mxu0 }
 0x273   : > { %v3831_v25 = vpop.f32.mrf.mxu1 }
 0x274   : > { %v2410_v56 = vpop.f32.mrf.mxu0 }
 0x275   : > { %v2411_v34 = vadd.f32 %v2410_v56, %v2409_v37  ;;  %v3833_v57 = vpop.f32.mrf.mxu1 }
 0x276   : > { %v2412_v62 = vpop.f32.mrf.mxu0 }
 0x277   : > { %v3835_v63 = vpop.f32.mrf.mxu1 }
 0x278   : > { %v2413_v1 = vpop.f32.mrf.mxu0 }
 0x279   : > { %v2414_v2 = vadd.f32 %v2413_v1, %v2412_v62  ;;  %v3837_v46 = vpop.f32.mrf.mxu1 }
 0x27a   : > { %v2415_v32 = vpop.f32.mrf.mxu0 }
 0x27b   : > { %v3839_v17 = vpop.f32.mrf.mxu1 }
 0x27c   : > { %v2416_v12 = vpop.f32.mrf.mxu0 }
 0x27d   : > { %v2417_v19 = vadd.f32 %v2416_v12, %v2415_v32  ;;  %v3841_v41 = vpop.f32.mrf.mxu1 }
 0x27e   : > { %v2418_v36 = vpop.f32.mrf.mxu0 }
 0x27f   : > { %v3843_v33 = vpop.f32.mrf.mxu1 }
 0x280   : > { %v2419_v39 = vpop.f32.mrf.mxu0 }
 0x281   : > { %v2420_v58 = vadd.f32 %v2419_v39, %v2418_v36  ;;  %v3845_v7 = vpop.f32.mrf.mxu1 }
 0x282   : > { %v2421_v8 = vpop.f32.mrf.mxu0 }
 0x283   : > { %v3847_v22 = vpop.f32.mrf.mxu1 }
 0x284   : > { %v2422_v23 = vpop.f32.mrf.mxu0 }
 0x285   : > { %v3849_v27 = vadd.f32 %v2422_v23, %v2421_v8  ;;  %v3851_v42 = vpop.f32.mrf.mxu1 }
 0x286   : > { %4188 = vst [vmem:[#allocation20_spill] sm:$0xff] %v3851_v42  ;;  %v2424_v43 = vpop.f32.mrf.mxu0 }
 0x287   : > { %v3853_v3 = vpop.f32.mrf.mxu1 }
 0x288   : > { %4189 = vst [vmem:[#allocation21_spill] sm:$0xff] %v3853_v3  ;;  %v2425_v9 = vpop.f32.mrf.mxu0 }
 0x289   : > { %v3855_v49 = vadd.f32 %v2425_v9, %v2424_v43 }
 0x28a   : > { %v2323_v60 = vpop.f32.mrf.mxu1  ;;  %v2427_v61 = vpop.f32.mrf.mxu0 }
 0x28c   : > { %v2324_v5 = vpop.f32.mrf.mxu1  ;;  %v2428_v20 = vpop.f32.mrf.mxu0 }
 0x28d   : > { %v2325_v31 = vadd.f32 %v2324_v5, %v2323_v60  ;;  %v3857_v21 = vadd.f32 %v2428_v20, %v2427_v61 }
 0x28e   : > { %v2326_v59 = vpop.f32.mrf.mxu1  ;;  %v2430_v28 = vpop.f32.mrf.mxu0 }
 0x28f   : > { %v961_v53 = vadd.f32 %v2325_v31, %v815_v13 }
 0x290   : > { %v2327_v10 = vpop.f32.mrf.mxu1  ;;  %v2431_v47 = vpop.f32.mrf.mxu0 }
 0x291   : > { %v2328_v44 = vadd.f32 %v2327_v10, %v2326_v59  ;;  %v3859_v48 = vadd.f32 %v2431_v47, %v2430_v28  ;;  %v3861_v14 = vadd.f32 %v2405_v26, %v961_v53 }
 0x293   : > { %v966_v29 = vadd.f32 %v2691_v0, %v2328_v44  ;;  %v2329_v11 = vpop.f32.mrf.mxu1  ;;  %v2433_v52 = vpop.f32.mrf.mxu0 }
 0x295   : > { %v2330_v40 = vpop.f32.mrf.mxu1  ;;  %v2434_v51 = vpop.f32.mrf.mxu0  ;;  %v3863_v18 = vadd.f32 %v2408_v38, %v966_v29 }
 0x296   : > { %v2331_v24 = vadd.f32 %v2330_v40, %v2329_v11  ;;  %v3865_v35 = vadd.f32 %v2434_v51, %v2433_v52 }
 0x298   : > { %v971_v45 = vadd.f32 %v2331_v24, %v825_v6  ;;  %v2332_v55 = vpop.f32.mrf.mxu1  ;;  %v2436_v4 = vpop.f32.mrf.mxu0 }
 0x29a   : > { %v2333_v13 = vpop.f32.mrf.mxu1  ;;  %v2437_v15 = vpop.f32.mrf.mxu0  ;;  %v3867_v30 = vadd.f32 %v2411_v34, %v971_v45 }
 0x29b   : > { %v2334_v16 = vadd.f32 %v2333_v13, %v2332_v55  ;;  %v3869_v26 = vadd.f32 %v2437_v15, %v2436_v4 }
 0x29d   : > { %v976_v0 = vadd.f32 %v3827_v50, %v2334_v16  ;;  %v2335_v37 = vpop.f32.mrf.mxu1  ;;  %v2439_v56 = vpop.f32.mrf.mxu0 }
 0x29f   : > { %v2336_v62 = vpop.f32.mrf.mxu1  ;;  %v2440_v38 = vpop.f32.mrf.mxu0  ;;  %v3872_v1 = vadd.f32 %v2414_v2, %v976_v0 }
 0x2a0   : > { %v2337_v32 = vadd.f32 %v2336_v62, %v2335_v37  ;;  %v2441_v12 = vadd.f32 %v2440_v38, %v2439_v56 }
 0x2a2   : > { %v981_v6 = vadd.f32 %v2337_v32, %v3831_v25  ;;  %v2338_v36 = vpop.f32.mrf.mxu1  ;;  %v2442_v39 = vpop.f32.mrf.mxu0 }
 0x2a4   : > { %v2339_v8 = vpop.f32.mrf.mxu1  ;;  %v2443_v34 = vpop.f32.mrf.mxu0  ;;  %v3875_v23 = vadd.f32 %v2417_v19, %v981_v6 }
 0x2a5   : > { %v2340_v43 = vadd.f32 %v2339_v8, %v2338_v36  ;;  %v3877_v9 = vadd.f32 %v2443_v34, %v2442_v39 }
 0x2a7   : > { %v986_v50 = vadd.f32 %v3829_v54, %v2340_v43  ;;  %v2341_v60 = vpop.f32.mrf.mxu1  ;;  %v2445_v61 = vpop.f32.mrf.mxu0 }
 0x2a9   : > { %v2342_v5 = vpop.f32.mrf.mxu1  ;;  %v2446_v2 = vpop.f32.mrf.mxu0  ;;  %v3880_v20 = vadd.f32 %v2420_v58, %v986_v50 }
 0x2aa   : > { %v2343_v31 = vadd.f32 %v2342_v5, %v2341_v60  ;;  %v3882_v59 = vadd.f32 %v2446_v2, %v2445_v61 }
 0x2ac   : > { %4190 = vst [vmem:[#allocation22_spill] sm:$0xff] %v3882_v59  ;;  %v991_v25 = vadd.f32 %v2343_v31, %v3835_v63  ;;  %v2344_v28 = vpop.f32.mrf.mxu1  ;;  %v3885_v53 = vpop.f32.mrf.mxu0 }
 0x2ad   : > { %4191 = vst [vmem:[#allocation23_spill] sm:$0xff] %v3885_v53 }
 0x2ae   : > { %v2345_v19 = vpop.f32.mrf.mxu1  ;;  %v3887_v10 = vpop.f32.mrf.mxu0  ;;  %v3890_v47 = vadd.f32 %v3849_v27, %v991_v25 }
 0x2af   : > { %4192 = vst [vmem:[#allocation24_spill] sm:$0xff] %v3887_v10  ;;  %v2346_v54 = vadd.f32 %v2345_v19, %v2344_v28 }
 0x2b1   : > { %v996_v44 = vadd.f32 %v3833_v57, %v2346_v54  ;;  %v2347_v29 = vpop.f32.mrf.mxu1 }
 0x2b2   : > { %v3893_v58 = vpop.f32.mrf.mxu0 }
 0x2b3   : > { %v2348_v11 = vpop.f32.mrf.mxu1  ;;  %v3896_v52 = vadd.f32 %v3855_v49, %v996_v44 }
 0x2b4   : > { %v2349_v63 = vadd.f32 %v2348_v11, %v2347_v29  ;;  %v3898_v40 = vpop.f32.mrf.mxu0 }
 0x2b5   : > { %v2350_v51 = vpop.f32.mrf.mxu1 }
 0x2b6   : > { %v1001_v24 = vadd.f32 %v2349_v63, %v3839_v17  ;;  %v2518_v45 = vpop.f32.mrf.mxu0 }
 0x2b7   : > { %v2351_v55 = vpop.f32.mrf.mxu1 }
 0x2b8   : > { %v2352_v27 = vadd.f32 %v2351_v55, %v2350_v51  ;;  %v2519_v4 = vpop.f32.mrf.mxu0  ;;  %v3902_v13 = vadd.f32 %v3857_v21, %v1001_v24 }
 0x2b9   : > { %v2353_v57 = vpop.f32.mrf.mxu1  ;;  %v2520_v42 = vadd.f32 %v2519_v4, %v2518_v45 }
 0x2ba   : > { %v1006_v15 = vadd.f32 %v3837_v46, %v2352_v27  ;;  %v3905_v16 = vpop.f32.mrf.mxu0 }
 0x2bb   : > { %v2354_v49 = vpop.f32.mrf.mxu1 }
 0x2bc   : > { %v2355_v0 = vadd.f32 %v2354_v49, %v2353_v57  ;;  %v3907_v37 = vpop.f32.mrf.mxu0  ;;  %v3910_v56 = vadd.f32 %v3859_v48, %v1006_v15 }
 0x2bd   : > { %v2356_v17 = vpop.f32.mrf.mxu1 }
 0x2be   : > { %v1011_v62 = vadd.f32 %v2355_v0, %v3843_v33  ;;  %v2524_v38 = vpop.f32.mrf.mxu0 }
 0x2bf   : > { %v2357_v32 = vpop.f32.mrf.mxu1 }
 0x2c0   : > { %v2525_v6 = vpop.f32.mrf.mxu0  ;;  %v3914_v21 = vadd.f32 %v3865_v35, %v1011_v62 }
 0x2c1   : > { %v2359_v36 = vpop.f32.mrf.mxu1 }
 0x2c2   : > { %4193 = vst [vmem:[#allocation25_spill] sm:$0xff] %v3914_v21  ;;  %v3916_v46 = vpop.f32.mrf.mxu0 }
 0x2c3   : > { %v2360_v39 = vpop.f32.mrf.mxu1 }
 0x2c4   : > { %v2361_v8 = vadd.f32 %v2360_v39, %v2359_v36  ;;  %v3918_v34 = vpop.f32.mrf.mxu0 }
 0x2c5   : > { %v3920_v43 = vpop.f32.mrf.mxu1 }
 0x2c6   : > { %v1021_v48 = vadd.f32 %v2361_v8, %v3847_v22  ;;  %v2530_v50 = vpop.f32.mrf.mxu0 }
 0x2c7   : > { %v2363_v60 = vpop.f32.mrf.mxu1 }
 0x2c8   : > { %v2531_v33 = vpop.f32.mrf.mxu0  ;;  %v3923_v61 = vadd.f32 %v2441_v12, %v1021_v48 }
 0x2c9   : > { %v3925_v5 = vpop.f32.mrf.mxu1 }
 0x2ca   : > { %4194 = vst [vmem:[#allocation26_spill] sm:$0xff] %v3923_v61  ;;  %v3927_v35 = vpop.f32.mrf.mxu0 }
 0x2cb   : > { %v3929_v2 = vpop.f32.mrf.mxu1 }
 0x2cc   : > { %v3931_v31 = vpop.f32.mrf.mxu0 }
 0x2cd   : > { %v3933_v25 = vpop.f32.mrf.mxu1 }
 0x2ce   : > { %v2536_v28 = vpop.f32.mrf.mxu0 }
 0x2cf   : > { %v3935_v19 = vpop.f32.mrf.mxu1 }
 0x2d0   : > { %v2537_v54 = vpop.f32.mrf.mxu0 }
 0x2d1   : > { %v2747_v22 = vpop.f32.mrf.mxu1 }
 0x2d2   : > { %v3937_v44 = vpop.f32.mrf.mxu0  ;;  %v1499_v21 = vadd.f32 %v2747_v22, %v3863_v18  ;;  %v3980_v18 = vld [vmem:[#allocation8 + $0x2] ss:$0 sm:$0xff] }
 0x2d3   : > { %v1419_v29 = vpop.f32.mrf.mxu1 }
 0x2d4   : > { %v3939_v12 = vpop.f32.mrf.mxu0  ;;  %v1498_v3 = vadd.f32 %v1419_v29, %v3861_v14  ;;  %v1797_v45 = vadd.f32 %v2520_v42, %v1499_v21  ;;  %v3985_v29 = vld [vmem:[#allocation8 + $0x3] ss:$0 sm:$0xff] }
 0x2d5   : > { %v2750_v11 = vpop.f32.mrf.mxu1 }
 0x2d6   : > { %v3941_v63 = vpop.f32.mrf.mxu0 }
 0x2d7   : > { %v1429_v51 = vpop.f32.mrf.mxu1 }
 0x2d8   : > { %v3943_v24 = vpop.f32.mrf.mxu0  ;;  %v1500_v22 = vadd.f32 %v1429_v51, %v3867_v30 }
 0x2d9   : > { %v2753_v55 = vpop.f32.mrf.mxu1 }
 0x2da   : > { %v3945_v27 = vpop.f32.mrf.mxu0 }
 0x2db   : > { %4195 = vst [vmem:[#allocation27_spill] sm:$0xff] %v3945_v27  ;;  %v1439_v57 = vpop.f32.mrf.mxu1 }
 0x2dc   : > { %v3947_v15 = vpop.f32.mrf.mxu0  ;;  %v1502_v30 = vadd.f32 %v1439_v57, %v3875_v23 }
 0x2dd   : > { %4196 = vst [vmem:[#allocation28_spill] sm:$0xff] %v3947_v15  ;;  %v2756_v49 = vpop.f32.mrf.mxu1 }
 0x2de   : > { %v3949_v62 = vpop.f32.mrf.mxu0 }
 0x2df   : > { %v1449_v0 = vpop.f32.mrf.mxu1  ;;  %4197 = vst [vmem:[#allocation29_spill] sm:$0xff] %v3949_v62 }
 0x2e0   : > { %v3955_v8 = vpop.f32.mrf.mxu0 }
 0x2e1   : > { %v3951_v36 = vpop.f32.mrf.mxu1  ;;  %4198 = vst [vmem:[#allocation30_spill] sm:$0xff] %v3955_v8  ;;  %v2358_v8 = vadd.f32 %v2357_v32, %v2356_v17  ;;  %v2532_v17 = vadd.f32 %v2531_v33, %v2530_v50  ;;  %v1503_v32 = vadd.f32 %v2753_v55, %v3880_v20  ;;  %v1505_v33 = vadd.f32 %v2756_v49, %v3896_v52 }
 0x2e2   : > { %v3961_v61 = vpop.f32.mrf.mxu0  ;;  %v1504_v52 = vadd.f32 %v1449_v0, %v3890_v47  ;;  %v2367_v49 = vadd.f32 %v3929_v2, %v3925_v5  ;;  %v2541_v5 = vadd.f32 %v3939_v12, %v3937_v44 }
 0x2e3   : > { %v3953_v39 = vpop.f32.mrf.mxu1  ;;  %4201 = vst [vmem:[#allocation33_spill] sm:$0xff] %v3961_v61  ;;  %v2526_v61 = vadd.f32 %v2525_v6, %v2524_v38  ;;  %v1016_v14 = vadd.f32 %v3841_v41, %v2358_v8  ;;  %v2364_v41 = vadd.f32 %v2363_v60, %v3920_v43 }
 0x2e4   : > { %v3968_v15 = vpop.f32.mrf.mxu0  ;;  %v1506_v2 = vadd.f32 %v3953_v39, %v3902_v13 }
 0x2e5   : > { %v3957_v48 = vpop.f32.mrf.mxu1 }
 0x2e6   : > { %4199 = vst [vmem:[#allocation31_spill] sm:$0xff] %v3957_v48  ;;  %v3978_v48 = vpop.f32.mrf.mxu0 }
 0x2e7   : > { %v3959_v59 = vpop.f32.mrf.mxu1 }
 0x2e8   : > { %4200 = vst [vmem:[#allocation32_spill] sm:$0xff] %v3959_v59  ;;  %v2517_v59 = vadd.f32 %v3898_v40, %v3893_v58  ;;  %v3989_v40 = vpop.f32.mrf.mxu0  ;;  %v4206_v44 = vld [vmem:[#allocation30_spill] sm:$0xff] }
 0x2e9   : > { %v3963_v10 = vpop.f32.mrf.mxu1 }
 0x2ea   : > { %4202 = vst [vmem:[#allocation34_spill] sm:$0xff] %v3963_v10  ;;  %v1501_v10 = vadd.f32 %v2750_v11, %v3872_v1  ;;  %v2523_v1 = vadd.f32 %v3907_v37, %v3905_v16  ;;  %v2538_v37 = vadd.f32 %v2537_v54, %v2536_v28  ;;  %v1026_v11 = vadd.f32 %v3845_v7, %v2364_v41 }
 0x2eb   : > { %v3965_v53 = vpop.f32.mrf.mxu1  ;;  %v2535_v28 = vadd.f32 %v3931_v31, %v3927_v35  ;;  %v2544_v7 = vadd.f32 %v3943_v24, %v3941_v63  ;;  %v1507_v35 = vadd.f32 %v3951_v36, %v3910_v56 }
 0x2ec   : > { %4203 = vst [vmem:[#allocation35_spill] sm:$0xff] %v3965_v53  ;;  %v1796_v53 = vadd.f32 %v2517_v59, %v1498_v3  ;;  %v1799_v6 = vadd.f32 %v2526_v61, %v1501_v10  ;;  %v2529_v3 = vadd.f32 %v3918_v34, %v3916_v46  ;;  %v1798_v16 = vadd.f32 %v2523_v1, %v1500_v22  ;;  %v4000_v46 = vpop.f32.mrf.mxu0  ;;  %v4205_v1 = vld [vmem:[#allocation29_spill] sm:$0xff] }
 0x2ed   : > { %v3970_v27 = vpop.f32.mrf.mxu1  ;;  %v1801_v61 = vadd.f32 %v2532_v17, %v1503_v32  ;;  %v1803_v31 = vadd.f32 %v2538_v37, %v1505_v33  ;;  %v1334_v56 = vadd.f32 %v3877_v9, %v1026_v11  ;;  %v1802_v24 = vadd.f32 %v2535_v28, %v1504_v52 }
 0x2ee   : > { %4204 = vst [vmem:[#allocation36_spill] sm:$0xff] %v3970_v27  ;;  %v4017_v0 = vpop.f32.mrf.mxu0  ;;  %v2550_v12 = vadd.f32 %v4206_v44, %v4205_v1  ;;  %v1805_v9 = vadd.f32 %v2544_v7, %v1507_v35  ;;  %v2556_v11 = vadd.f32 %v3989_v40, %v3978_v48  ;;  %v4215_v7 = vld [vmem:[#allocation23_spill] sm:$0xff]  ;;  %v4216_v35 = vld [vmem:[#allocation24_spill] sm:$0xff]  ;;  %v4218_v48 = vld [vmem:[#allocation26_spill] sm:$0xff] }
 0x2ef   : > { %v3973_v62 = vpop.f32.mrf.mxu1 }
 0x2f1   : > { %v2803_v4 = vpop.f32.mrf.mxu1  ;;  %v4214_v28 = vld [vmem:[#allocation34_spill] sm:$0xff] }
 0x2f2   : > { %v1974_v27 = vadd.f32 %v2803_v4, %v1797_v45  ;;  %v1511_v52 = vadd.f32 %v4214_v28, %v1334_v56 }
 0x2f3   : > { %v1894_v58 = vpop.f32.mrf.mxu1  ;;  %v4219_v40 = vld [vmem:[#allocation35_spill] sm:$0xff] }
 0x2f4   : > { %v1995_v42 = vmul.f32 %v3980_v18, %v1974_v27  ;;  %v1973_v38 = vadd.f32 %v1894_v58, %v1796_v53  ;;  %v1332_v53 = vadd.f32 %v3869_v26, %v1016_v14  ;;  %v1800_v26 = vadd.f32 %v2529_v3, %v1502_v30 }
 0x2f5   : > { %v2806_v20 = vpop.f32.mrf.mxu1  ;;  %v2370_v58 = vadd.f32 %v3935_v19, %v3933_v25  ;;  %v4210_v25 = vld [vmem:[#allocation28_spill] sm:$0xff] }
 0x2f6   : > { %v2016_v59 = vadd.f32 %v3985_v29, %v1995_v42  ;;  %v1994_v21 = vmul.f32 %v3980_v18, %v1973_v38  ;;  %v1976_v50 = vadd.f32 %v2806_v20, %v1799_v6  ;;  %v4207_v42 = vld [vmem:[#allocation31_spill] sm:$0xff]  ;;  %v2560_v38 = vpop.f32.mrf.mxu0  ;;  %v4208_v20 = vld [vmem:[#allocation21_spill] sm:$0xff] }
 0x2f7   : > { %v1904_v10 = vpop.f32.mrf.mxu1  ;;  %v1509_v13 = vadd.f32 %v4207_v42, %v1332_v53  ;;  %v1804_v53 = vadd.f32 %v2541_v5, %v1506_v2  ;;  %v2559_v42 = vadd.f32 %v4017_v0, %v4000_v46 }
 0x2f8   : > { %v2032_v34 = vmax.f32 %v2016_v59, 0.0  ;;  %v2015_v23 = vadd.f32 %v3985_v29, %v1994_v21  ;;  %v1997_v43 = vmul.f32 %v3980_v18, %v1976_v50  ;;  %v1975_v60 = vadd.f32 %v1904_v10, %v1798_v16  ;;  %v4209_v21 = vld [vmem:[#allocation27_spill] sm:$0xff]  ;;  %v4211_v50 = vld [vmem:[#allocation25_spill] sm:$0xff]  ;;  %v4212_v16 = vld [vmem:[#allocation32_spill] sm:$0xff] }
 0x2f9   : > { %v2809_v54 = vpop.f32.mrf.mxu1  ;;  %v1031_v59 = vadd.f32 %v2367_v49, %v4208_v20  ;;  %v2547_v19 = vadd.f32 %v4210_v25, %v4209_v21  ;;  %v1508_v37 = vadd.f32 %v4212_v16, %v4211_v50 }
 0x2fa   : > { %2048 = vst [vmem:[%s3432_s25 + $0x8] sm:$0xff] %v2032_v34  ;;  %v2031_v51 = vmax.f32 %v2015_v23, 0.0  ;;  %v2018_v55 = vadd.f32 %v3985_v29, %v1997_v43  ;;  %v1996_v27 = vmul.f32 %v3980_v18, %v1975_v60  ;;  %v1978_v57 = vadd.f32 %v2809_v54, %v1801_v61  ;;  %v4213_v43 = vld [vmem:[#allocation20_spill] sm:$0xff] }
 0x2fb   : > { %v1914_v47 = vpop.f32.mrf.mxu1  ;;  %v1036_v60 = vadd.f32 %v4213_v43, %v2370_v58  ;;  %v1809_v58 = vadd.f32 %v2556_v11, %v1511_v52 }
 0x2fc   : > { %2047 = vst [vmem:[%s3432_s25] sm:$0xff] %v2031_v51  ;;  %v2034_v8 = vmax.f32 %v2018_v55, 0.0  ;;  %v2017_v45 = vadd.f32 %v3985_v29, %v1996_v27  ;;  %v1999_v4 = vmul.f32 %v3980_v18, %v1978_v57  ;;  %v1977_v22 = vadd.f32 %v1914_v47, %v1800_v26  ;;  %v2561_v51 = vpop.f32.mrf.mxu0 }
 0x2fd   : > { %v2812_v63 = vpop.f32.mrf.mxu1  ;;  %v1807_v26 = vadd.f32 %v2550_v12, %v1509_v13  ;;  %v2450_v47 = vadd.f32 %v4216_v35, %v4215_v7  ;;  %v4221_v13 = vld [vmem:[#allocation36_spill] sm:$0xff] }
 0x2fe   : > { %2050 = vst [vmem:[%s3432_s25 + $0x18] sm:$0xff] %v2034_v8  ;;  %v2033_v36 = vmax.f32 %v2017_v45, 0.0  ;;  %v2020_v14 = vadd.f32 %v3985_v29, %v1999_v4  ;;  %v1998_v17 = vmul.f32 %v3980_v18, %v1977_v22  ;;  %v1980_v32 = vadd.f32 %v2812_v63, %v1803_v31  ;;  %v4217_v31 = vld [vmem:[#allocation33_spill] sm:$0xff] }
 0x2ff   : > { %v1924_v39 = vpop.f32.mrf.mxu1  ;;  %v2553_v8 = vadd.f32 %v3968_v15, %v4217_v31  ;;  %v1510_v45 = vadd.f32 %v4219_v40, %v4218_v48  ;;  %v1806_v22 = vadd.f32 %v2547_v19, %v1508_v37 }
 0x300   : > { %2049 = vst [vmem:[%s3432_s25 + $0x10] sm:$0xff] %v2033_v36  ;;  %v2036_v6 = vmax.f32 %v2020_v14, 0.0  ;;  %v2019_v3 = vadd.f32 %v3985_v29, %v1998_v17  ;;  %v2001_v41 = vmul.f32 %v3980_v18, %v1980_v32  ;;  %v1979_v30 = vadd.f32 %v1924_v39, %v1802_v24  ;;  %v4220_v36 = vld [vmem:[#allocation22_spill] sm:$0xff] }
 0x301   : > { %v2815_v33 = vpop.f32.mrf.mxu1  ;;  %v1336_v24 = vadd.f32 %v2450_v47, %v1036_v60  ;;  %v1335_v14 = vadd.f32 %v4220_v36, %v1031_v59  ;;  %v2562_v17 = vadd.f32 %v2561_v51, %v2560_v38 }
 0x302   : > { %2052 = vst [vmem:[%s3432_s25 + $0x28] sm:$0xff] %v2036_v6  ;;  %v2035_v10 = vmax.f32 %v2019_v3, 0.0  ;;  %v2022_v61 = vadd.f32 %v3985_v29, %v2001_v41  ;;  %v2000_v34 = vmul.f32 %v3980_v18, %v1979_v30  ;;  %v1982_v23 = vadd.f32 %v2815_v33, %v1805_v9 }
 0x303   : > { %v1934_v54 = vpop.f32.mrf.mxu1  ;;  %v1513_v39 = vadd.f32 %v4221_v13, %v1336_v24  ;;  %v1512_v9 = vadd.f32 %v3973_v62, %v1335_v14  ;;  %v1808_v6 = vadd.f32 %v2553_v8, %v1510_v45 }
 0x304   : > { %2051 = vst [vmem:[%s3432_s25 + $0x20] sm:$0xff] %v2035_v10  ;;  %v2038_v55 = vmax.f32 %v2022_v61, 0.0  ;;  %v2021_v27 = vadd.f32 %v3985_v29, %v2000_v34  ;;  %v2003_v57 = vmul.f32 %v3980_v18, %v1982_v23  ;;  %v1981_v49 = vadd.f32 %v1934_v54, %v1804_v53 }
 0x305   : > { %v2818_v4 = vpop.f32.mrf.mxu1  ;;  %v1811_v21 = vadd.f32 %v2562_v17, %v1513_v39  ;;  %v1810_v50 = vadd.f32 %v2559_v42, %v1512_v9 }
 0x306   : > { %2054 = vst [vmem:[%s3432_s25 + $0x38] sm:$0xff] %v2038_v55  ;;  %v2037_v5 = vmax.f32 %v2021_v27, 0.0  ;;  %v2024_v2 = vadd.f32 %v3985_v29, %v2003_v57  ;;  %v2002_v56 = vmul.f32 %v3980_v18, %v1981_v49  ;;  %v1984_v63 = vadd.f32 %v2818_v4, %v1807_v26 }
 0x307   : > { %v1944_v32 = vpop.f32.mrf.mxu1 }
 0x308   : > { %2053 = vst [vmem:[%s3432_s25 + $0x30] sm:$0xff] %v2037_v5  ;;  %v2040_v15 = vmax.f32 %v2024_v2, 0.0  ;;  %v2023_v1 = vadd.f32 %v3985_v29, %v2002_v56  ;;  %v2005_v44 = vmul.f32 %v3980_v18, %v1984_v63  ;;  %v1983_v12 = vadd.f32 %v1944_v32, %v1806_v22 }
 0x309   : > { %v2821_v38 = vpop.f32.mrf.mxu1 }
 0x30a   : > { %2056 = vst [vmem:[%s3432_s25 + $0x48] sm:$0xff] %v2040_v15  ;;  %v2039_v3 = vmax.f32 %v2023_v1, 0.0  ;;  %v2026_v41 = vadd.f32 %v3985_v29, %v2005_v44  ;;  %v2004_v30 = vmul.f32 %v3980_v18, %v1983_v12  ;;  %v1986_v20 = vadd.f32 %v2821_v38, %v1809_v58 }
 0x30b   : > { %v1954_v59 = vpop.f32.mrf.mxu1 }
 0x30c   : > { %2055 = vst [vmem:[%s3432_s25 + $0x40] sm:$0xff] %v2039_v3  ;;  %v2042_v46 = vmax.f32 %v2026_v41, 0.0  ;;  %v2025_v0 = vadd.f32 %v3985_v29, %v2004_v30  ;;  %v2007_v62 = vmul.f32 %v3980_v18, %v1986_v20  ;;  %v1985_v25 = vadd.f32 %v1954_v59, %v1808_v6 }
 0x30d   : > { %v2824_v19 = vpop.f32.mrf.mxu1 }
 0x30e   : > { %2058 = vst [vmem:[%s3432_s25 + $0x58] sm:$0xff] %v2042_v46  ;;  %v2041_v16 = vmax.f32 %v2025_v0, 0.0  ;;  %v2028_v37 = vadd.f32 %v3985_v29, %v2007_v62  ;;  %v2006_v33 = vmul.f32 %v3980_v18, %v1985_v25  ;;  %v1988_v53 = vadd.f32 %v2824_v19, %v1811_v21 }
 0x30f   : > { %v1964_v10 = vpop.f32.mrf.mxu1 }
 0x310   : > { %2057 = vst [vmem:[%s3432_s25 + $0x50] sm:$0xff] %v2041_v16  ;;  %v2044_v61 = vmax.f32 %v2028_v37, 0.0  ;;  %v2027_v34 = vadd.f32 %v3985_v29, %v2006_v33  ;;  %v2009_v23 = vmul.f32 %v3980_v18, %v1988_v53  ;;  %v1987_v43 = vadd.f32 %v1964_v10, %v1810_v50 }
 0x312   : > { %2060 = vst [vmem:[%s3432_s25 + $0x68] sm:$0xff] %v2044_v61  ;;  %v2043_v60 = vmax.f32 %v2027_v34, 0.0  ;;  %v2030_v11 = vadd.f32 %v3985_v29, %v2009_v23  ;;  %v2008_v28 = vmul.f32 %v3980_v18, %v1987_v43 }
 0x314   : > { %2059 = vst [vmem:[%s3432_s25 + $0x60] sm:$0xff] %v2043_v60  ;;  %v2046_v52 = vmax.f32 %v2030_v11, 0.0  ;;  %v2029_v54 = vadd.f32 %v3985_v29, %v2008_v28 }
 0x316   : > { %2062 = vst [vmem:[%s3432_s25 + $0x78] sm:$0xff] %v2046_v52  ;;  %v2045_v26 = vmax.f32 %v2029_v54, 0.0 }
 0x318   : > { %2061 = vst [vmem:[%s3432_s25 + $0x70] sm:$0xff] %v2045_v26 }
 0x319   : > { %3064 = shalt.err (!%p3061_p4)
}
 0x31a   : > { %s3065_s14 = scalar_lea.hbm %s4093_s30, 2048  ;;  %s3069_s21 = scalar_lea.hbm %s4154_s4, 8192 }
 0x31b   : > { %p3066_p6 = scmp.ne.s32.totalorder %s4093_s30, %s3065_s14  ;;  %p3070_p3 = scmp.lt.s32.totalorder %s4093_s30, %s4154_s4 }
 0x31c   : > { %p3071_p5 = scmp.lt.s32.totalorder %s3069_s21, %s3065_s14 }
 0x31d   : > { %p3067_p8 = pnand %p3066_p6, %p3315_p11 }
 0x31e   : > { %p3072_p7 = por %p3071_p5, %p3070_p3 }
 0x31f   : > { %p3068_p10 = pneg %p3067_p8 }
 0x321   : > { %p3073_p2 = pnand %p3072_p7, %p3068_p10 }
 0x323   : > { %3076 = shalt.err (!%p3073_p2)
}
 0x324   : > { %s3167_s2 = smov 128   ;;  %s3168_s25 = smov 8  }
 0x325   : > { %2843 = dma.vmem_to_hbm [thread:$0]  (%p3315_p11), %s4095_s19, 2048, %s4093_s30, %s2064_s9, %s3167_s2, %s3167_s2, %s3168_s25  }
 0x326 PF: > { %s4222_s27 = sld [smem:[#allocation17_spill]]  ;;  %p2870_p9 = scmp.ge.s32.totalorder %s3155_s22, 2 }
 0x327   : > { %s2094_s29 = sand.u32 1, %s3127_s15  }
 0x328   : > { %s2095_s12 = scalar_lea.sflag [#allocation5], %s2094_s29 }
 0x32c   : > { %p4223_p12 = scmp.ne.s32.totalorder %s4222_s27, 0 }
 0x32e   : > { %p2860_p13 = pnand %p2870_p9, %p4223_p12 }
 0x330   : > { %p2861_p0 = pneg %p2860_p13 }
 0x332   : > { %3122 = dma.done.wait (%p2861_p0), %s2095_s12, 2048  }
 0x333   : > { %3124 = vsyncadd (%p2861_p0), %s2095_s12, 4294965248  ;;  %s22_s22 = sadd.s32 1, %s3155_s22   ;;  %s4224_s19 = sld [smem:[#allocation16_spill]] }
 0x334   : > { %p19_p1 = scmp.ge.s32.totalorder %s22_s22, 6   ;;  %s4225_s24 = sld [smem:[#allocation18_spill]] }
 0x335   : > { %s4226_s21 = sld [smem:[#allocation19_spill]]  ;;  %s4227_s15 = smov %s3131_s16 }
 0x336   : > { %s4228_s16 = smov %s3135_s17  ;;  %s4229_s17 = smov %s3332_s26 }
 0x337   : > { %s4230_s18 = smov %s3147_s20  ;;  %21 = sbr.rel (!%p19_p1) target bundleno = 13 (0xd), region = 104 }
 0x33a   : > { %s4231_s20 = smov %s4225_s24 }
 0x33c   :  { %2100 = vsyncpa [#allocation4], 1 }
 0x33d   :  { %2102 = vsyncpa [#allocation4 + $0x1], 1 }
 0x33e   :  { %2103 = vsyncpa [#allocation7], 1 }
 0x33f   :  { %2104 = vsyncpa [#allocation10], 1 }
 0x340   :  { %2105 = vsyncpa [#allocation5], 1 }
 0x341   :  { %2107 = vsyncpa [#allocation5 + $0x1], 1 }

</bundles_post_ra>
